<compile_context>
chip_gen: v5e
topology: v5e:2x2
jax: 0.10.0
libtpu: 0.0.40
codegen_flags: <defaults>
</compile_context>

<pallas_src>
import jax
import jax.numpy as jnp
from jax.experimental import pallas as pl
from jax.experimental.pallas import tpu as pltpu

H = 500                      # logical hidden / feature size (torch module)
HP = 512                     # padded feature size (multiple of 128)
PITCH_IN = 128               # pitch / velocity input feature size
K_IN = 2 * PITCH_IN          # 256 = fused pitch|velocity contraction dim
TB_MAX = 128                 # max batch tile (fills v5e MXU rows; fine on v6e/v7x)
NEG_SLOPE = 0.01             # torch.nn.LeakyReLU default negative_slope


def _leaky(x):
    return jnp.where(x > 0, x, NEG_SLOPE * x)


def _bf16(x):
    return x.astype(jnp.bfloat16)


def disc_kernel(x_ref, dur_ref, step_ref, w_in_ref, w1_ref, w2_ref,
                rows_ref, b_last_ref, out_ref):
    """One batch tile of the (single effective timestep) discriminator.

    rows_ref (6, HP) f32 rows:
      0: b_in  = b_pitch + b_vel + b_dur + b_step
      1: w_dur  (duration Linear weight column)
      2: w_step (step Linear weight column)
      3: b1
      4: b2
      5: w_last = W3 @ Wi   (linear_intermediate folded into linear3, f32)
    """
    # NOTE: the reference module's nn.LSTMCell output is discarded by its own
    # forward() and is deliberately not computed here (dead compute removed).
    add = jnp.dot(x_ref[...], w_in_ref[...], preferred_element_type=jnp.float32)
    add = add + rows_ref[0:1, :]
    add = add + dur_ref[...] * rows_ref[1:2, :]      # duration scalar: VPU FMA
    add = add + step_ref[...] * rows_ref[2:3, :]     # step scalar:    VPU FMA
    lin1 = _leaky(jnp.dot(_bf16(add), w1_ref[...],
                          preferred_element_type=jnp.float32) + rows_ref[3:4, :])
    lin2 = _leaky(jnp.dot(_bf16(lin1), w2_ref[...],
                          preferred_element_type=jnp.float32) + rows_ref[4:5, :])
    # Folded linear_intermediate->linear3: f32 VPU multiply + XLU lane reduce.
    logit = jnp.sum(lin2 * rows_ref[5:6, :], axis=-1, keepdims=True)
    logit = logit + b_last_ref[...]                  # (1,1) broadcast
    out_ref[...] = jax.nn.sigmoid(logit)


# ----------------------------- host-side glue -----------------------------

def _pad_to(x, shape):
    return jnp.pad(x, [(0, s - d) for d, s in zip(x.shape, shape)])


def _round_up(x, m):
    return ((x + m - 1) // m) * m


def init_params(key):
    """torch-default-like init (uniform +-1/sqrt(fan_in)).

    nn.LSTMCell parameters are intentionally omitted: the reference forward
    discards the LSTMCell output, so it never affects the result.
    """
    keys = jax.random.split(key, 8)

    def linear(k, out_f, in_f):
        kw, kb = jax.random.split(k)
        bound = 1.0 / (in_f ** 0.5)
        w = jax.random.uniform(kw, (out_f, in_f), jnp.float32, -bound, bound)
        b = jax.random.uniform(kb, (out_f,), jnp.float32, -bound, bound)
        return w, b

    p = {}
    p['w_pitch'], p['b_pitch'] = linear(keys[0], H, PITCH_IN)
    p['w_vel'],   p['b_vel']   = linear(keys[1], H, PITCH_IN)
    p['w_dur'],   p['b_dur']   = linear(keys[2], H, 1)
    p['w_step'],  p['b_step']  = linear(keys[3], H, 1)
    p['w1'], p['b1'] = linear(keys[4], H, H)
    p['w2'], p['b2'] = linear(keys[5], H, H)
    p['wi'], p['bi'] = linear(keys[6], H, H)
    p['w3'], p['b3'] = linear(keys[7], 1, H)
    return p


def pack_params(p):
    """(in, out) layout, feature dims zero-padded to 512, bf16 matmul weights.

    Folding is done in f32 BEFORE any bf16 cast.
    """
    def row(v):
        return _pad_to(v.astype(jnp.float32), (HP,))

    # Fused pitch|velocity projection: (256, HP) bf16, exactly 2 K-groups.
    w_in = jnp.concatenate([p['w_pitch'].T, p['w_vel'].T], axis=0)   # (256, 500)
    w_in = _pad_to(w_in, (K_IN, HP)).astype(jnp.bfloat16)

    w1 = _pad_to(p['w1'].T.astype(jnp.float32), (HP, HP)).astype(jnp.bfloat16)
    w2 = _pad_to(p['w2'].T.astype(jnp.float32), (HP, HP)).astype(jnp.bfloat16)

    # Fold linear_intermediate into linear3 (no activation between them):
    #   logit = W3 @ (Wi @ lin2 + bi) + b3 = (W3 @ Wi) @ lin2 + (W3 @ bi + b3)
    w_last = (p['w3'].astype(jnp.float32) @ p['wi'].astype(jnp.float32))[0]  # (500,)
    b_last = (p['w3'] @ p['bi'] + p['b3']).astype(jnp.float32)               # (1,)

    rows = jnp.stack([
        row(p['b_pitch'] + p['b_vel'] + p['b_dur'] + p['b_step']),  # b_in
        row(p['w_dur'][:, 0]),                                      # w_dur col
        row(p['w_step'][:, 0]),                                     # w_step col
        row(p['b1']),
        row(p['b2']),
        row(w_last),                                                # folded W3@Wi
    ], axis=0)                                                      # (6, HP) f32

    return (w_in, w1, w2, rows, b_last.reshape(1, 1))


@jax.jit
def lstm_discriminator_batch(packed, pitches, velocities, durations, steps):
    """Batched forward over B sequences: (B,T,128),(B,T,128),(B,T,1),(B,T,1) -> (B,1).

    Mathematically identical to running the torch time loop per sequence:
    `info` never feeds back into `add`, so only the last timestep matters.
    """
    w_in, w1, w2, rows, b_last = packed
    B = pitches.shape[0]

    # Layout plumbing: last-step inputs as one lane-aligned (B, 256) slab.
    x = jnp.concatenate([pitches[:, -1, :], velocities[:, -1, :]],
                        axis=-1).astype(jnp.bfloat16)               # (B, 256)
    dur = durations[:, -1, :].astype(jnp.float32)                   # (B, 1)
    stp = steps[:, -1, :].astype(jnp.float32)                       # (B, 1)

    tb = min(TB_MAX, _round_up(B, 16))     # batch tile (multiple of 16: bf16 sublanes)
    bp = _round_up(B, tb)
    if bp != B:
        pad = ((0, bp - B), (0, 0))
        x = jnp.pad(x, pad)
        dur = jnp.pad(dur, pad)
        stp = jnp.pad(stp, pad)

    out = pl.pallas_call(
        disc_kernel,
        out_shape=jax.ShapeDtypeStruct((bp, 1), jnp.float32),
        grid=(bp // tb,),
        in_specs=[
            pl.BlockSpec((tb, K_IN), lambda b: (b, 0)),    # x (per-tile)
            pl.BlockSpec((tb, 1), lambda b: (b, 0)),       # duration scalars
            pl.BlockSpec((tb, 1), lambda b: (b, 0)),       # step scalars
            pl.BlockSpec((K_IN, HP), lambda b: (0, 0)),    # w_in   (VMEM resident)
            pl.BlockSpec((HP, HP), lambda b: (0, 0)),      # w1     (VMEM resident)
            pl.BlockSpec((HP, HP), lambda b: (0, 0)),      # w2     (VMEM resident)
            pl.BlockSpec((6, HP), lambda b: (0, 0)),       # bias / weight rows
            pl.BlockSpec((1, 1), lambda b: (0, 0)),        # folded final bias
        ],
        out_specs=pl.BlockSpec((tb, 1), lambda b: (b, 0)),
        compiler_params=pltpu.CompilerParams(
            dimension_semantics=("parallel",)),            # shards across v7x TCs
    )(x, dur, stp, w_in, w1, w2, rows, b_last)
    return out[:B]                                          # (B, 1)


def lstm_discriminator(packed, pitches, velocities, durations, steps):
    """Original module API: (T,128),(T,128),(T,1),(T,1) -> (1,)."""
    out = lstm_discriminator_batch(packed, pitches[None], velocities[None],
                                   durations[None], steps[None])
    return out[0]


def reference_forward(p, pitches, velocities, durations, steps):
    """Pure-JAX f32 replica of the PyTorch forward (full time loop, unpadded)."""
    info = jnp.zeros((H,), jnp.float32)
    for t in range(pitches.shape[0]):
        # nn.LSTMCell output is discarded by the reference module — skipped.
        pitch = p['w_pitch'] @ pitches[t] + p['b_pitch']
        step = p['w_step'] @ steps[t] + p['b_step']
        velocity = p['w_vel'] @ velocities[t] + p['b_vel']
        duration = p['w_dur'] @ durations[t] + p['b_dur']
        add = pitch + step + velocity + duration
        lin1 = _leaky(p['w1'] @ add + p['b1'])
        lin2 = _leaky(p['w2'] @ lin1 + p['b2'])
        info = p['wi'] @ lin2 + p['bi']
    logit = p['w3'] @ info + p['b3']
    return jax.nn.sigmoid(logit)


if __name__ == "__main__":
    key = jax.random.PRNGKey(0)
    kp, kd = jax.random.split(key)
    params = init_params(kp)
    packed = pack_params(params)

    B, T = 16, 8   # small demo shapes: batch of sequences, seq length 8
    k1, k2, k3, k4 = jax.random.split(kd, 4)
    pitches = jax.random.normal(k1, (B, T, PITCH_IN), jnp.float32)
    velocities = jax.random.normal(k2, (B, T, PITCH_IN), jnp.float32)
    durations = jax.random.normal(k3, (B, T, 1), jnp.float32)
    steps = jax.random.normal(k4, (B, T, 1), jnp.float32)

    # Batched kernel call.
    out_b = jax.block_until_ready(
        lstm_discriminator_batch(packed, pitches, velocities, durations, steps))
    assert out_b.shape == (B, 1), out_b.shape

    # Original single-sequence API.
    out_1 = jax.block_until_ready(
        lstm_discriminator(packed, pitches[0], velocities[0], durations[0], steps[0]))
    assert out_1.shape == (1,), out_1.shape

    # Pure-JAX reference (full time loop, f32, unpadded), per sequence.
    ref_b = jnp.stack([
        reference_forward(params, pitches[i], velocities[i], durations[i], steps[i])
        for i in range(B)], axis=0)                                   # (B, 1)

    assert jnp.allclose(out_b, ref_b, atol=1e-2, rtol=1e-2), (out_b, ref_b)
    assert jnp.allclose(out_1, ref_b[0], atol=1e-2, rtol=1e-2), (out_1, ref_b[0])
    print("KERNEL_OK")
</pallas_src>

<mosaic_0001>
module attributes {stable_mosaic.version = 11 : i64} {
  func.func @disc_kernel(%arg0: i32, %arg1: memref<16x256xbf16, #tpu.memory_space<vmem>>, %arg2: memref<16x1xf32, #tpu.memory_space<vmem>>, %arg3: memref<16x1xf32, #tpu.memory_space<vmem>>, %arg4: memref<256x512xbf16, #tpu.memory_space<vmem>>, %arg5: memref<512x512xbf16, #tpu.memory_space<vmem>>, %arg6: memref<512x512xbf16, #tpu.memory_space<vmem>>, %arg7: memref<6x512xf32, #tpu.memory_space<vmem>>, %arg8: memref<1x1xf32, #tpu.memory_space<vmem>>, %arg9: memref<16x1xf32, #tpu.memory_space<vmem>>) attributes {dimension_semantics = [#tpu.dimension_semantics<parallel>], iteration_bounds = array<i64: 1>, scalar_prefetch = 0 : i64, scratch_operands = 0 : i64, tpu.core_type = #tpu.core_type<tc>, window_params = [{transform_indices = @transform_0, window_bounds = array<i64: 16, 256>}, {transform_indices = @transform_1, window_bounds = array<i64: 16, 1>}, {transform_indices = @transform_2, window_bounds = array<i64: 16, 1>}, {pipeline_mode = #tpu.pipeline_mode<synchronous>, transform_indices = @transform_3, window_bounds = array<i64: 256, 512>}, {pipeline_mode = #tpu.pipeline_mode<synchronous>, transform_indices = @transform_4, window_bounds = array<i64: 512, 512>}, {pipeline_mode = #tpu.pipeline_mode<synchronous>, transform_indices = @transform_5, window_bounds = array<i64: 512, 512>}, {pipeline_mode = #tpu.pipeline_mode<synchronous>, transform_indices = @transform_6, window_bounds = array<i64: 6, 512>}, {pipeline_mode = #tpu.pipeline_mode<synchronous>, transform_indices = @transform_7, window_bounds = array<i64: 1, 1>}, {transform_indices = @transform_8, window_bounds = array<i64: 16, 1>}]} {
    %c0 = arith.constant 0 : index
    %c0_0 = arith.constant 0 : index
    %0 = vector.load %arg1[%c0, %c0_0] : memref<16x256xbf16, #tpu.memory_space<vmem>>, vector<16x256xbf16>
    %c0_1 = arith.constant 0 : index
    %c0_2 = arith.constant 0 : index
    %1 = vector.load %arg4[%c0_1, %c0_2] : memref<256x512xbf16, #tpu.memory_space<vmem>>, vector<256x512xbf16>
    %cst = arith.constant dense<0.000000e+00> : vector<16x512xf32>
    %2 = tpu.matmul %0, %1, %cst {dimension_numbers = #tpu.dot_dimension_numbers<[1], [0], [0], [1], [0, 0, 1, 1], [], []>} : vector<16x256xbf16>, vector<256x512xbf16>, vector<16x512xf32> -> vector<16x512xf32>
    %c0_3 = arith.constant 0 : index
    %c0_4 = arith.constant 0 : index
    %3 = vector.load %arg7[%c0_3, %c0_4] : memref<6x512xf32, #tpu.memory_space<vmem>>, vector<1x512xf32>
    %4 = vector.broadcast %3 : vector<1x512xf32> to vector<16x512xf32>
    %5 = arith.addf %2, %4 : vector<16x512xf32>
    %c0_5 = arith.constant 0 : index
    %c0_6 = arith.constant 0 : index
    %6 = vector.load %arg2[%c0_5, %c0_6] : memref<16x1xf32, #tpu.memory_space<vmem>>, vector<16x1xf32>
    %c1 = arith.constant 1 : index
    %c0_7 = arith.constant 0 : index
    %7 = vector.load %arg7[%c1, %c0_7] : memref<6x512xf32, #tpu.memory_space<vmem>>, vector<1x512xf32>
    %8 = vector.broadcast %6 : vector<16x1xf32> to vector<16x512xf32>
    %9 = vector.broadcast %7 : vector<1x512xf32> to vector<16x512xf32>
    %10 = arith.mulf %8, %9 : vector<16x512xf32>
    %11 = arith.addf %5, %10 : vector<16x512xf32>
    %c0_8 = arith.constant 0 : index
    %c0_9 = arith.constant 0 : index
    %12 = vector.load %arg3[%c0_8, %c0_9] : memref<16x1xf32, #tpu.memory_space<vmem>>, vector<16x1xf32>
    %c2 = arith.constant 2 : index
    %c0_10 = arith.constant 0 : index
    %13 = vector.load %arg7[%c2, %c0_10] : memref<6x512xf32, #tpu.memory_space<vmem>>, vector<1x512xf32>
    %14 = vector.broadcast %12 : vector<16x1xf32> to vector<16x512xf32>
    %15 = vector.broadcast %13 : vector<1x512xf32> to vector<16x512xf32>
    %16 = arith.mulf %14, %15 : vector<16x512xf32>
    %17 = arith.addf %11, %16 : vector<16x512xf32>
    %18 = arith.truncf %17 : vector<16x512xf32> to vector<16x512xbf16>
    %c0_11 = arith.constant 0 : index
    %c0_12 = arith.constant 0 : index
    %19 = vector.load %arg5[%c0_11, %c0_12] : memref<512x512xbf16, #tpu.memory_space<vmem>>, vector<512x512xbf16>
    %cst_13 = arith.constant dense<0.000000e+00> : vector<16x512xf32>
    %20 = tpu.matmul %18, %19, %cst_13 {dimension_numbers = #tpu.dot_dimension_numbers<[1], [0], [0], [1], [0, 0, 1, 1], [], []>} : vector<16x512xbf16>, vector<512x512xbf16>, vector<16x512xf32> -> vector<16x512xf32>
    %c3 = arith.constant 3 : index
    %c0_14 = arith.constant 0 : index
    %21 = vector.load %arg7[%c3, %c0_14] : memref<6x512xf32, #tpu.memory_space<vmem>>, vector<1x512xf32>
    %22 = vector.broadcast %21 : vector<1x512xf32> to vector<16x512xf32>
    %23 = arith.addf %20, %22 : vector<16x512xf32>
    %cst_15 = arith.constant 0.000000e+00 : f32
    %24 = vector.broadcast %cst_15 : f32 to vector<16x512xf32>
    %25 = arith.cmpf ogt, %23, %24 : vector<16x512xf32>
    %cst_16 = arith.constant 0.00999999977 : f32
    %26 = vector.broadcast %cst_16 : f32 to vector<16x512xf32>
    %27 = arith.mulf %26, %23 : vector<16x512xf32>
    %28 = arith.select %25, %23, %27 : vector<16x512xi1>, vector<16x512xf32>
    %29 = arith.truncf %28 : vector<16x512xf32> to vector<16x512xbf16>
    %c0_17 = arith.constant 0 : index
    %c0_18 = arith.constant 0 : index
    %30 = vector.load %arg6[%c0_17, %c0_18] : memref<512x512xbf16, #tpu.memory_space<vmem>>, vector<512x512xbf16>
    %cst_19 = arith.constant dense<0.000000e+00> : vector<16x512xf32>
    %31 = tpu.matmul %29, %30, %cst_19 {dimension_numbers = #tpu.dot_dimension_numbers<[1], [0], [0], [1], [0, 0, 1, 1], [], []>} : vector<16x512xbf16>, vector<512x512xbf16>, vector<16x512xf32> -> vector<16x512xf32>
    %c4 = arith.constant 4 : index
    %c0_20 = arith.constant 0 : index
    %32 = vector.load %arg7[%c4, %c0_20] : memref<6x512xf32, #tpu.memory_space<vmem>>, vector<1x512xf32>
    %33 = vector.broadcast %32 : vector<1x512xf32> to vector<16x512xf32>
    %34 = arith.addf %31, %33 : vector<16x512xf32>
    %cst_21 = arith.constant 0.000000e+00 : f32
    %35 = vector.broadcast %cst_21 : f32 to vector<16x512xf32>
    %36 = arith.cmpf ogt, %34, %35 : vector<16x512xf32>
    %cst_22 = arith.constant 0.00999999977 : f32
    %37 = vector.broadcast %cst_22 : f32 to vector<16x512xf32>
    %38 = arith.mulf %37, %34 : vector<16x512xf32>
    %39 = arith.select %36, %34, %38 : vector<16x512xi1>, vector<16x512xf32>
    %c5 = arith.constant 5 : index
    %c0_23 = arith.constant 0 : index
    %40 = vector.load %arg7[%c5, %c0_23] : memref<6x512xf32, #tpu.memory_space<vmem>>, vector<1x512xf32>
    %41 = vector.broadcast %40 : vector<1x512xf32> to vector<16x512xf32>
    %42 = arith.mulf %39, %41 : vector<16x512xf32>
    %cst_24 = arith.constant dense<0.000000e+00> : vector<16xf32>
    %43 = vector.multi_reduction <add>, %42, %cst_24 [1] : vector<16x512xf32> to vector<16xf32>
    %44 = vector.shape_cast %43 : vector<16xf32> to vector<16x1xf32>
    %c0_25 = arith.constant 0 : index
    %c0_26 = arith.constant 0 : index
    %45 = vector.load %arg8[%c0_25, %c0_26] : memref<1x1xf32, #tpu.memory_space<vmem>>, vector<1x1xf32>
    %46 = vector.broadcast %45 : vector<1x1xf32> to vector<16x1xf32>
    %47 = arith.addf %44, %46 : vector<16x1xf32>
    %48 = arith.negf %47 : vector<16x1xf32>
    %49 = math.exp %48 : vector<16x1xf32>
    %cst_27 = arith.constant 1.000000e+00 : f32
    %50 = vector.broadcast %cst_27 : f32 to vector<16x1xf32>
    %51 = arith.addf %50, %49 : vector<16x1xf32>
    %52 = arith.divf %50, %51 : vector<16x1xf32>
    %c0_28 = arith.constant 0 : index
    %c0_29 = arith.constant 0 : index
    %53 = vector.load %arg9[%c0_28, %c0_29] : memref<16x1xf32, #tpu.memory_space<vmem>>, vector<16x1xf32>
    tpu.vector_store %arg9[%c0_28, %c0_29], %52 {strides = array<i32>} : memref<16x1xf32, #tpu.memory_space<vmem>>, vector<16x1xf32>,
    return
  }
  func.func @transform_0(%arg0: i32) -> (i32, i32) {
    %c0_i32 = arith.constant 0 : i32
    %c0_i32_0 = arith.constant 0 : i32
    return %arg0, %c0_i32 : i32, i32
  }
  func.func @transform_1(%arg0: i32) -> (i32, i32) {
    %c0_i32 = arith.constant 0 : i32
    %c0_i32_0 = arith.constant 0 : i32
    return %arg0, %c0_i32 : i32, i32
  }
  func.func @transform_2(%arg0: i32) -> (i32, i32) {
    %c0_i32 = arith.constant 0 : i32
    %c0_i32_0 = arith.constant 0 : i32
    return %arg0, %c0_i32 : i32, i32
  }
  func.func @transform_3(%arg0: i32) -> (i32, i32) {
    %c0_i32 = arith.constant 0 : i32
    %c0_i32_0 = arith.constant 0 : i32
    %c0_i32_1 = arith.constant 0 : i32
    return %c0_i32, %c0_i32_0 : i32, i32
  }
  func.func @transform_4(%arg0: i32) -> (i32, i32) {
    %c0_i32 = arith.constant 0 : i32
    %c0_i32_0 = arith.constant 0 : i32
    %c0_i32_1 = arith.constant 0 : i32
    return %c0_i32, %c0_i32_0 : i32, i32
  }
  func.func @transform_5(%arg0: i32) -> (i32, i32) {
    %c0_i32 = arith.constant 0 : i32
    %c0_i32_0 = arith.constant 0 : i32
    %c0_i32_1 = arith.constant 0 : i32
    return %c0_i32, %c0_i32_0 : i32, i32
  }
  func.func @transform_6(%arg0: i32) -> (i32, i32) {
    %c0_i32 = arith.constant 0 : i32
    %c0_i32_0 = arith.constant 0 : i32
    %c0_i32_1 = arith.constant 0 : i32
    return %c0_i32, %c0_i32_0 : i32, i32
  }
  func.func @transform_7(%arg0: i32) -> (i32, i32) {
    %c0_i32 = arith.constant 0 : i32
    %c0_i32_0 = arith.constant 0 : i32
    %c0_i32_1 = arith.constant 0 : i32
    return %c0_i32, %c0_i32_0 : i32, i32
  }
  func.func @transform_8(%arg0: i32) -> (i32, i32) {
    %c0_i32 = arith.constant 0 : i32
    %c0_i32_0 = arith.constant 0 : i32
    return %arg0, %c0_i32 : i32, i32
  }
}

</mosaic_0001>

<bundles_post_ra>
// kernel: lstm_discriminator_batch.1
= control target key start
LH: loop header
LB: loop body
LE: loop exit
PB: predicated region body
PF: predicated region fallthrough
CT: control target
= control target key end

     0   :  { %s4761_s0 = inlined_call_operand.vmem [shape: bf16[16,256], index: 0, kind: input, shape index: {}]   ;;  %s4762_s1 = inlined_call_operand.vmem [shape: f32[16,1], index: 1, kind: input, shape index: {}]   ;;  %s4763_s2 = inlined_call_operand.vmem [shape: f32[16,1], index: 2, kind: input, shape index: {}]   ;;  %s4764_s3 = inlined_call_operand.hbm [shape: bf16[256,512], index: 3, kind: input, shape index: {}]   ;;  %s4765_s4 = inlined_call_operand.hbm [shape: bf16[512,512], index: 4, kind: input, shape index: {}]   ;;  %s4766_s5 = inlined_call_operand.hbm [shape: bf16[512,512], index: 5, kind: input, shape index: {}]   ;;  %s4767_s6 = inlined_call_operand.vmem [shape: f32[6,512], index: 6, kind: input, shape index: {}]   ;;  %s4768_s7 = inlined_call_operand.<no memory space> [shape: f32[1,1], index: 7, kind: input, shape index: {}]   ;;  %s4769_s8 = inlined_call_operand.vmem [shape: f32[16,1], index: 8, kind: output, shape index: {}]  }
   0x1   :  { %v13_v0 = vstv %s4768_s7 }
   0x2   :  { %14 = vst [vmem:[#allocation2] sm:$0x1] %v13_v0 }
   0x3   :  { %15 = vsyncpa [#allocation4], 0 }
   0x4   :  { %16 = vsyncpa [#allocation6], 0  ;;  %s40_s9 = sshll.u32 %s4765_s4, 4  ;;  %s4528_s10 = smov [#allocation5]   ;;  %s41_s9 = int_to_ptr.hbm [resolvable:$true] %s40_s9 }
   0x5   :  { %s42_s11 = sshll.u32 %s4528_s10, 4  ;;  %s27_s14 = sshll.u32 %s4764_s3, 4  ;;  %s43_s11 = int_to_ptr.vmem [resolvable:$true] %s42_s11  ;;  %s28_s14 = int_to_ptr.hbm [resolvable:$true] %s27_s14 }
   0x6   :  { %s4529_s15 = smov 256   ;;  %s4530_s16 = smov 16  }
   0x7   :  { %48 = dma.hbm_to_vmem [thread:$0]  %s41_s9, 16384, %s43_s11, [#allocation6], %s4529_s15, %s4529_s15, %s4530_s16  }
   0x8   :  { %s4531_s7 = smov [#allocation3]   ;;  %s53_s20 = sshll.u32 %s4766_s5, 4  ;;  %s54_s20 = int_to_ptr.hbm [resolvable:$true] %s53_s20 }
   0x9   :  { %s29_s17 = sshll.u32 %s4531_s7, 4  ;;  %s4532_s4 = smov [#allocation7]   ;;  %s30_s17 = int_to_ptr.vmem [resolvable:$true] %s29_s17 }
   0xa   :  { %35 = dma.hbm_to_vmem [thread:$0]  %s28_s14, 8192, %s30_s17, [#allocation4], %s4529_s15, %s4529_s15, %s4530_s16  }
   0xb   :  { %s55_s21 = sshll.u32 %s4532_s4, 4  ;;  %s56_s21 = int_to_ptr.vmem [resolvable:$true] %s55_s21 }
   0xc   :  { %61 = dma.hbm_to_vmem [thread:$0]  %s54_s20, 16384, %s56_s21, [#allocation6], %s4529_s15, %s4529_s15, %s4530_s16  }
   0xd   :  { %4524 = dma.done.wait [#allocation4], 8192  }
   0xe   :  { %4525 = vsyncadd [#allocation4], 4294959104 }
   0xf   :  { %4526 = dma.done.wait [#allocation6], 32768  }
  0x10   :  { %4527 = vsyncadd [#allocation6], 4294934528  ;;  %v2940_v1 = vld [vmem:[#allocation3 + $0xe0] sm:$0xf]  ;;  %v4145_v2 = vld [vmem:[#allocation3 + $0xec] sm:$0xf0] }
  0x11   :  { %v3068_v3 = vld [vmem:[#allocation3 + $0x1e0] sm:$0xf]  ;;  %v2941_v4 = vor.u32 %v4145_v2, %v2940_v1  ;;  %v4177_v5 = vld [vmem:[#allocation3 + $0x1ec] sm:$0xf0]  ;;  %v4143_v6 = vld [vmem:[#allocation3 + $0xe4] sm:$0xf] }
  0x12   :  { %v2942_v7 = vld [vmem:[#allocation3 + $0xf0] sm:$0xf0]  ;;  %v3069_v8 = vor.u32 %v4177_v5, %v3068_v3  ;;  %v4175_v10 = vld [vmem:[#allocation3 + $0x1e4] sm:$0xf]  ;;  %v2924_v12 = vld [vmem:[#allocation3 + $0xc0] sm:$0xf] }
  0x13   :  { %v2945_v9 = vor.u32 %v4143_v6, %v2942_v7  ;;  %v3070_v11 = vld [vmem:[#allocation3 + $0x1f0] sm:$0xf0]  ;;  %484 = vmatpush.bf16.msra.mxu0 %v2941_v4  ;;  %v4141_v14 = vld [vmem:[#allocation3 + $0xcc] sm:$0xf0]  ;;  %v3052_v15 = vld [vmem:[#allocation3 + $0x1c0] sm:$0xf] }
  0x14   :  { %v3073_v13 = vor.u32 %v4175_v10, %v3070_v11  ;;  %v4173_v16 = vld [vmem:[#allocation3 + $0x1cc] sm:$0xf0]  ;;  %498 = vmatpush.bf16.msra.mxu1 %v3069_v8  ;;  %v2925_v17 = vor.u32 %v4141_v14, %v2924_v12  ;;  %v4139_v19 = vld [vmem:[#allocation3 + $0xc4] sm:$0xf]  ;;  %v2926_v20 = vld [vmem:[#allocation3 + $0xd0] sm:$0xf0] }
  0x15   :  { %512 = vmatpush.bf16.msra.mxu2 %v2945_v9  ;;  %v3053_v18 = vor.u32 %v4173_v16, %v3052_v15  ;;  %v4171_v21 = vld [vmem:[#allocation3 + $0x1c4] sm:$0xf]  ;;  %v2929_v22 = vor.u32 %v4139_v19, %v2926_v20  ;;  %v3054_v23 = vld [vmem:[#allocation3 + $0x1d0] sm:$0xf0]  ;;  %v2908_v24 = vld [vmem:[#allocation3 + $0xa0] sm:$0xf] }
  0x16   :  { %526 = vmatpush.bf16.msra.mxu3 %v3073_v13  ;;  %v4137_v25 = vld [vmem:[#allocation3 + $0xac] sm:$0xf0]  ;;  %v3057_v26 = vor.u32 %v4171_v21, %v3054_v23  ;;  %v3036_v27 = vld [vmem:[#allocation3 + $0x1a0] sm:$0xf]  ;;  %v4135_v29 = vld [vmem:[#allocation3 + $0xa4] sm:$0xf] }
  0x17   :  { %v4169_v28 = vld [vmem:[#allocation3 + $0x1ac] sm:$0xf0]  ;;  %485 = vmatpush.bf16.msra.mxu0 %v2925_v17  ;;  %v2909_v30 = vor.u32 %v4137_v25, %v2908_v24  ;;  %v2910_v31 = vld [vmem:[#allocation3 + $0xb0] sm:$0xf0]  ;;  %v4167_v32 = vld [vmem:[#allocation3 + $0x1a4] sm:$0xf] }
  0x18   :  { %v3038_v33 = vld [vmem:[#allocation3 + $0x1b0] sm:$0xf0]  ;;  %499 = vmatpush.bf16.msra.mxu1 %v3053_v18  ;;  %v3037_v34 = vor.u32 %v4169_v28, %v3036_v27  ;;  %v2913_v35 = vor.u32 %v4135_v29, %v2910_v31  ;;  %v2892_v36 = vld [vmem:[#allocation3 + $0x80] sm:$0xf]  ;;  %v4133_v37 = vld [vmem:[#allocation3 + $0x8c] sm:$0xf0] }
  0x19   :  { %513 = vmatpush.bf16.msra.mxu2 %v2929_v22  ;;  %v3020_v38 = vld [vmem:[#allocation3 + $0x180] sm:$0xf]  ;;  %v3041_v39 = vor.u32 %v4167_v32, %v3038_v33  ;;  %v4165_v40 = vld [vmem:[#allocation3 + $0x18c] sm:$0xf0]  ;;  %v4131_v41 = vld [vmem:[#allocation3 + $0x84] sm:$0xf]  ;;  %v2893_v45 = vor.u32 %v4133_v37, %v2892_v36 }
  0x1a   :  { %527 = vmatpush.bf16.msra.mxu3 %v3057_v26  ;;  %v2894_v42 = vld [vmem:[#allocation3 + $0x90] sm:$0xf0]  ;;  %v4163_v43 = vld [vmem:[#allocation3 + $0x184] sm:$0xf]  ;;  %v3021_v46 = vor.u32 %v4165_v40, %v3020_v38  ;;  %v2876_v48 = vld [vmem:[#allocation3 + $0x60] sm:$0xf] }
  0x1b   :  { %v3022_v44 = vld [vmem:[#allocation3 + $0x190] sm:$0xf0]  ;;  %486 = vmatpush.bf16.msra.mxu0 %v2909_v30  ;;  %v2897_v47 = vor.u32 %v4131_v41, %v2894_v42  ;;  %v4129_v49 = vld [vmem:[#allocation3 + $0x6c] sm:$0xf0]  ;;  %v3004_v50 = vld [vmem:[#allocation3 + $0x160] sm:$0xf] }
  0x1c   :  { %500 = vmatpush.bf16.msra.mxu1 %v3037_v34  ;;  %v3025_v51 = vor.u32 %v4163_v43, %v3022_v44  ;;  %v4161_v52 = vld [vmem:[#allocation3 + $0x16c] sm:$0xf0]  ;;  %v4127_v53 = vld [vmem:[#allocation3 + $0x64] sm:$0xf]  ;;  %v2878_v54 = vld [vmem:[#allocation3 + $0x70] sm:$0xf0]  ;;  %v2877_v57 = vor.u32 %v4129_v49, %v2876_v48 }
  0x1d   :  { %514 = vmatpush.bf16.msra.mxu2 %v2913_v35  ;;  %v4159_v55 = vld [vmem:[#allocation3 + $0x164] sm:$0xf]  ;;  %v3006_v56 = vld [vmem:[#allocation3 + $0x170] sm:$0xf0]  ;;  %v3005_v58 = vor.u32 %v4161_v52, %v3004_v50  ;;  %v2881_v59 = vor.u32 %v4127_v53, %v2878_v54  ;;  %v2860_v60 = vld [vmem:[#allocation3 + $0x40] sm:$0xf] }
  0x1e   :  { %528 = vmatpush.bf16.msra.mxu3 %v3041_v39  ;;  %v4125_v61 = vld [vmem:[#allocation3 + $0x4c] sm:$0xf0]  ;;  %v2988_v62 = vld [vmem:[#allocation3 + $0x140] sm:$0xf]  ;;  %v3009_v63 = vor.u32 %v4159_v55, %v3006_v56  ;;  %v4123_v1 = vld [vmem:[#allocation3 + $0x44] sm:$0xf] }
  0x1f   :  { %487 = vmatpush.bf16.msra.mxu0 %v2893_v45  ;;  %v4157_v0 = vld [vmem:[#allocation3 + $0x14c] sm:$0xf0]  ;;  %v2862_v2 = vld [vmem:[#allocation3 + $0x50] sm:$0xf0]  ;;  %v4155_v3 = vld [vmem:[#allocation3 + $0x144] sm:$0xf]  ;;  %v2861_v5 = vor.u32 %v4125_v61, %v2860_v60 }
  0x20   :  { %501 = vmatpush.bf16.msra.mxu1 %v3021_v46  ;;  %v2990_v4 = vld [vmem:[#allocation3 + $0x150] sm:$0xf0]  ;;  %v2989_v6 = vor.u32 %v4157_v0, %v2988_v62  ;;  %v2865_v7 = vor.u32 %v4123_v1, %v2862_v2  ;;  %v2844_v8 = vld [vmem:[#allocation3 + $0x20] sm:$0xf]  ;;  %v4121_v9 = vld [vmem:[#allocation3 + $0x2c] sm:$0xf0] }
  0x21   :  { %515 = vmatpush.bf16.msra.mxu2 %v2897_v47  ;;  %v2972_v10 = vld [vmem:[#allocation3 + $0x120] sm:$0xf]  ;;  %v2993_v11 = vor.u32 %v4155_v3, %v2990_v4  ;;  %v4153_v12 = vld [vmem:[#allocation3 + $0x12c] sm:$0xf0]  ;;  %v4119_v13 = vld [vmem:[#allocation3 + $0x24] sm:$0xf]  ;;  %v2845_v17 = vor.u32 %v4121_v9, %v2844_v8 }
  0x22   :  { %529 = vmatpush.bf16.msra.mxu3 %v3025_v51  ;;  %v2846_v14 = vld [vmem:[#allocation3 + $0x30] sm:$0xf0]  ;;  %v4151_v15 = vld [vmem:[#allocation3 + $0x124] sm:$0xf]  ;;  %v2828_v18 = vld [vmem:[#allocation3] sm:$0xf]  ;;  %v2973_v21 = vor.u32 %v4153_v12, %v2972_v10 }
  0x23   :  { %488 = vmatpush.bf16.msra.mxu0 %v2877_v57  ;;  %v2974_v16 = vld [vmem:[#allocation3 + $0x130] sm:$0xf0]  ;;  %v4117_v19 = vld [vmem:[#allocation3 + $0xc] sm:$0xf0]  ;;  %v2956_v20 = vld [vmem:[#allocation3 + $0x100] sm:$0xf]  ;;  %v2849_v22 = vor.u32 %v4119_v13, %v2846_v14 }
  0x24   :  { %502 = vmatpush.bf16.msra.mxu1 %v3005_v58  ;;  %v4149_v23 = vld [vmem:[#allocation3 + $0x10c] sm:$0xf0]  ;;  %v4115_v24 = vld [vmem:[#allocation3 + $0x4] sm:$0xf]  ;;  %v2830_v25 = vld [vmem:[#allocation3 + $0x10] sm:$0xf0]  ;;  %v2977_v26 = vor.u32 %v4151_v15, %v2974_v16  ;;  %v2829_v33 = vor.u32 %v4117_v19, %v2828_v18 }
  0x25   :  { %516 = vmatpush.bf16.msra.mxu2 %v2881_v59  ;;  %v4147_v27 = vld [vmem:[#allocation3 + $0x104] sm:$0xf]  ;;  %v2958_v28 = vld [vmem:[#allocation3 + $0x110] sm:$0xf0]  ;;  %v2948_v29 = vld [vmem:[#allocation3 + $0xe8] sm:$0xf]  ;;  %v2957_v37 = vor.u32 %v4149_v23, %v2956_v20  ;;  %v2833_v38 = vor.u32 %v4115_v24, %v2830_v25 }
  0x26   :  { %530 = vmatpush.bf16.msra.mxu3 %v3009_v63  ;;  %v4146_v30 = vld [vmem:[#allocation3 + $0xf4] sm:$0xf0]  ;;  %v3076_v31 = vld [vmem:[#allocation3 + $0x1e8] sm:$0xf]  ;;  %v4144_v34 = vld [vmem:[#allocation3 + $0xec] sm:$0xf]  ;;  %v2961_v42 = vor.u32 %v4147_v27, %v2958_v28 }
  0x27   :  { %489 = vmatpush.bf16.msra.mxu0 %v2861_v5  ;;  %v4178_v32 = vld [vmem:[#allocation3 + $0x1f4] sm:$0xf0]  ;;  %v2950_v35 = vld [vmem:[#allocation3 + $0xf8] sm:$0xf0]  ;;  %v4176_v36 = vld [vmem:[#allocation3 + $0x1ec] sm:$0xf]  ;;  %v2949_v43 = vor.u32 %v4146_v30, %v2948_v29 }
  0x28   :  { %503 = vmatpush.bf16.msra.mxu1 %v2989_v6  ;;  %v3078_v39 = vld [vmem:[#allocation3 + $0x1f8] sm:$0xf0]  ;;  %v4114_v41 = vld [vmem:[%s4761_s0 + $0x4] sm:$0xf0]  ;;  %v4113_v44 = vld [vmem:[%s4761_s0 + $0x4] sm:$0xf]  ;;  %v3077_v46 = vor.u32 %v4178_v32, %v3076_v31  ;;  %v2953_v47 = vor.u32 %v4144_v34, %v2950_v35 }
  0x29   :  { %517 = vmatpush.bf16.msra.mxu2 %v2865_v7  ;;  %v2820_v40 = vld [vmem:[%s4761_s0] sm:$0xf]  ;;  %v2822_v45 = vld [vmem:[%s4761_s0 + $0x8] sm:$0xf0]  ;;  %v4142_v49 = vld [vmem:[#allocation3 + $0xd4] sm:$0xf0]  ;;  %v3081_v51 = vor.u32 %v4176_v36, %v3078_v39 }
  0x2a   :  { %531 = vmatpush.bf16.msra.mxu3 %v2993_v11  ;;  %v2932_v48 = vld [vmem:[#allocation3 + $0xc8] sm:$0xf]  ;;  %v4603_v52 = vor.u32 %v4114_v41, %v2820_v40  ;;  %v4174_v53 = vld [vmem:[#allocation3 + $0x1d4] sm:$0xf0]  ;;  %v4140_v54 = vld [vmem:[#allocation3 + $0xcc] sm:$0xf]  ;;  %v4605_v56 = vor.u32 %v4113_v44, %v2822_v45 }
  0x2b   :  { %490 = vmatpush.bf16.msra.mxu0 %v2845_v17  ;;  %v3060_v50 = vld [vmem:[#allocation3 + $0x1c8] sm:$0xf]  ;;  %v2934_v55 = vld [vmem:[#allocation3 + $0xd8] sm:$0xf0]  ;;  %v4172_v57 = vld [vmem:[#allocation3 + $0x1cc] sm:$0xf]  ;;  %v2933_v59 = vor.u32 %v4142_v49, %v2932_v48 }
  0x2c   :  { %504 = vmatpush.bf16.msra.mxu1 %v2973_v21  ;;  %v3062_v58 = vld [vmem:[#allocation3 + $0x1d8] sm:$0xf0]  ;;  %v3061_v60 = vor.u32 %v4174_v53, %v3060_v50  ;;  %v2937_v61 = vor.u32 %v4140_v54, %v2934_v55  ;;  %v2916_v62 = vld [vmem:[#allocation3 + $0xa8] sm:$0xf]  ;;  %v4138_v63 = vld [vmem:[#allocation3 + $0xb4] sm:$0xf0] }
  0x2d   :  { %518 = vmatpush.bf16.msra.mxu2 %v2849_v22  ;;  %v3044_v0 = vld [vmem:[#allocation3 + $0x1a8] sm:$0xf]  ;;  %v3065_v1 = vor.u32 %v4172_v57, %v3062_v58  ;;  %v4170_v2 = vld [vmem:[#allocation3 + $0x1b4] sm:$0xf0]  ;;  %v4136_v3 = vld [vmem:[#allocation3 + $0xac] sm:$0xf]  ;;  %v2917_v7 = vor.u32 %v4138_v63, %v2916_v62 }
  0x2e   :  { %532 = vmatpush.bf16.msra.mxu3 %v2977_v26  ;;  %v2918_v4 = vld [vmem:[#allocation3 + $0xb8] sm:$0xf0]  ;;  %v4168_v5 = vld [vmem:[#allocation3 + $0x1ac] sm:$0xf]  ;;  %v2900_v8 = vld [vmem:[#allocation3 + $0x88] sm:$0xf]  ;;  %v3045_v10 = vor.u32 %v4170_v2, %v3044_v0 }
  0x2f   :  { %491 = vmatpush.bf16.msra.mxu0 %v2829_v33  ;;  %v3046_v6 = vld [vmem:[#allocation3 + $0x1b8] sm:$0xf0]  ;;  %v2921_v11 = vor.u32 %v4136_v3, %v2918_v4  ;;  %v4134_v12 = vld [vmem:[#allocation3 + $0x94] sm:$0xf0]  ;;  %v3028_v13 = vld [vmem:[#allocation3 + $0x188] sm:$0xf] }
  0x30   :  { %505 = vmatpush.bf16.msra.mxu1 %v2957_v37  ;;  %v596_v9 = vld [vmem:[%s4762_s1] sm:$0xff]  ;;  %v3049_v15 = vor.u32 %v4168_v5, %v3046_v6  ;;  %v4166_v16 = vld [vmem:[#allocation3 + $0x194] sm:$0xf0]  ;;  %v4132_v17 = vld [vmem:[#allocation3 + $0x8c] sm:$0xf]  ;;  %v4533_v19 = vmov 0   ;;  %v2901_v22 = vor.u32 %v4134_v12, %v2900_v8 }
  0x31   :  { %519 = vmatpush.bf16.msra.mxu2 %v2833_v38  ;;  %v635_v14 = vld [vmem:[%s4763_s2] sm:$0xff]  ;;  %4441 = vset.pattern.permute.xlu0 %v4533_v19  ;;  %v4164_v20 = vld [vmem:[#allocation3 + $0x18c] sm:$0xf]  ;;  %v3029_v23 = vor.u32 %v4166_v16, %v3028_v13  ;;  %v2884_v25 = vld [vmem:[#allocation3 + $0x68] sm:$0xf] }
  0x32   :  { %533 = vmatpush.bf16.msra.mxu3 %v2961_v42  ;;  %492 = vmatmul.bf16.vlgmr.msra.gmra.mxu0 %v4603_v52  ;;  %v2902_v18 = vld [vmem:[#allocation3 + $0x98] sm:$0xf0]  ;;  %v4130_v26 = vld [vmem:[#allocation3 + $0x74] sm:$0xf0]  ;;  %v3012_v27 = vld [vmem:[#allocation3 + $0x168] sm:$0xf] }
  0x33   :  { %540 = vmatpush.bf16.msrb.mxu0 %v2949_v43  ;;  %506 = vmatmul.bf16.vlgmr.msra.gmra.mxu1 %v4605_v56  ;;  %v3030_v21 = vld [vmem:[#allocation3 + $0x198] sm:$0xf0]  ;;  %v2905_v24 = vor.u32 %v4132_v17, %v2902_v18  ;;  %v4162_v29 = vld [vmem:[#allocation3 + $0x174] sm:$0xf0]  ;;  %v4128_v30 = vld [vmem:[#allocation3 + $0x6c] sm:$0xf]  ;;  %v2885_v34 = vor.u32 %v4130_v26, %v2884_v25 }
  0x34   :  { %554 = vmatpush.bf16.msrb.mxu1 %v3077_v46  ;;  %520 = vmatmul.bf16.vlgmr.msra.gmra.mxu2 %v4603_v52  ;;  %v3033_v28 = vor.u32 %v4164_v20, %v3030_v21  ;;  %v2886_v31 = vld [vmem:[#allocation3 + $0x78] sm:$0xf0]  ;;  %v4160_v32 = vld [vmem:[#allocation3 + $0x16c] sm:$0xf]  ;;  %v2868_v35 = vld [vmem:[#allocation3 + $0x48] sm:$0xf]  ;;  %v3013_v37 = vor.u32 %v4162_v29, %v3012_v27 }
  0x35   :  { %568 = vmatpush.bf16.msrb.mxu2 %v2953_v47  ;;  %534 = vmatmul.bf16.vlgmr.msra.gmra.mxu3 %v4605_v56  ;;  %v3014_v33 = vld [vmem:[#allocation3 + $0x178] sm:$0xf0]  ;;  %v597_v36 = vld [vmem:[%s4762_s1 + $0x8] sm:$0xff]  ;;  %v2889_v38 = vor.u32 %v4128_v30, %v2886_v31  ;;  %v4126_v39 = vld [vmem:[#allocation3 + $0x54] sm:$0xf0] }
  0x36   :  { %582 = vmatpush.bf16.msrb.mxu3 %v3081_v51  ;;  %602 = vperm.xlu0 %4441, %v596_v9   ;;  %v2996_v40 = vld [vmem:[#allocation3 + $0x148] sm:$0xf]  ;;  %v3017_v42 = vor.u32 %v4160_v32, %v3014_v33  ;;  %v4158_v43 = vld [vmem:[#allocation3 + $0x154] sm:$0xf0]  ;;  %v4124_v44 = vld [vmem:[#allocation3 + $0x4c] sm:$0xf]  ;;  %v2869_v48 = vor.u32 %v4126_v39, %v2868_v35 }
  0x37   :  { %541 = vmatpush.bf16.msrb.mxu0 %v2933_v59  ;;  %4442 = vset.pattern.permute.xlu1 %v4533_v19  ;;  %v636_v41 = vld [vmem:[%s4763_s2 + $0x8] sm:$0xff]  ;;  %v2870_v45 = vld [vmem:[#allocation3 + $0x58] sm:$0xf0]  ;;  %v2997_v49 = vor.u32 %v4158_v43, %v2996_v40  ;;  %v4122_v53 = vld [vmem:[#allocation3 + $0x34] sm:$0xf0] }
  0x38   :  { %555 = vmatpush.bf16.msrb.mxu1 %v3061_v60  ;;  %641 = vperm.xlu1 %4442, %v635_v14   ;;  %v4156_v46 = vld [vmem:[#allocation3 + $0x14c] sm:$0xf]  ;;  %v2998_v47 = vld [vmem:[#allocation3 + $0x158] sm:$0xf0]  ;;  %v2873_v50 = vor.u32 %v4124_v44, %v2870_v45  ;;  %v2852_v51 = vld [vmem:[#allocation3 + $0x28] sm:$0xf] }
  0x39   :  { %569 = vmatpush.bf16.msrb.mxu2 %v2937_v61  ;;  %v2980_v54 = vld [vmem:[#allocation3 + $0x128] sm:$0xf]  ;;  %v3001_v55 = vor.u32 %v4156_v46, %v2998_v47  ;;  %v4154_v57 = vld [vmem:[#allocation3 + $0x134] sm:$0xf0]  ;;  %v4120_v58 = vld [vmem:[#allocation3 + $0x2c] sm:$0xf]  ;;  %v2853_v62 = vor.u32 %v4122_v53, %v2852_v51 }
  0x3a   :  { %583 = vmatpush.bf16.msrb.mxu3 %v3065_v1  ;;  %v2854_v59 = vld [vmem:[#allocation3 + $0x38] sm:$0xf0]  ;;  %v4152_v60 = vld [vmem:[#allocation3 + $0x12c] sm:$0xf]  ;;  %v2836_v63 = vld [vmem:[#allocation3 + $0x8] sm:$0xf]  ;;  %v2981_v0 = vor.u32 %v4154_v57, %v2980_v54 }
  0x3b   :  { %542 = vmatpush.bf16.msrb.mxu0 %v2917_v7  ;;  %v2982_v61 = vld [vmem:[#allocation3 + $0x138] sm:$0xf0]  ;;  %v2857_v1 = vor.u32 %v4120_v58, %v2854_v59  ;;  %v4118_v2 = vld [vmem:[#allocation3 + $0x14] sm:$0xf0]  ;;  %v2964_v3 = vld [vmem:[#allocation3 + $0x108] sm:$0xf] }
  0x3c   :  { %556 = vmatpush.bf16.msrb.mxu1 %v3045_v10  ;;  %v4150_v4 = vld [vmem:[#allocation3 + $0x114] sm:$0xf0]  ;;  %v2985_v5 = vor.u32 %v4152_v60, %v2982_v61  ;;  %v4116_v6 = vld [vmem:[#allocation3 + $0xc] sm:$0xf]  ;;  %v2838_v7 = vld [vmem:[#allocation3 + $0x18] sm:$0xf0]  ;;  %v2837_v12 = vor.u32 %v4118_v2, %v2836_v63 }
  0x3d   :  { %570 = vmatpush.bf16.msrb.mxu2 %v2921_v11  ;;  %v4148_v8 = vld [vmem:[#allocation3 + $0x10c] sm:$0xf]  ;;  %v2966_v9 = vld [vmem:[#allocation3 + $0x118] sm:$0xf0]  ;;  %v3199_v10 = vld [vmem:[#allocation5 + $0xe0] sm:$0xf]  ;;  %v2841_v16 = vor.u32 %v4116_v6, %v2838_v7 }
  0x3e   :  { %584 = vmatpush.bf16.msrb.mxu3 %v3049_v15  ;;  %607 = vperm.xlu0 %4441, %v597_v36   ;;  %v4209_v11 = vld [vmem:[#allocation5 + $0xec] sm:$0xf0]  ;;  %v3327_v13 = vld [vmem:[#allocation5 + $0x1e0] sm:$0xf]  ;;  %v2965_v15 = vor.u32 %v4150_v4, %v2964_v3  ;;  %v2969_v17 = vor.u32 %v4148_v8, %v2966_v9  ;;  %v3201_v7 = vld [vmem:[#allocation5 + $0xf0] sm:$0xf0] }
  0x3f   :  { %543 = vmatpush.bf16.msrb.mxu0 %v2901_v22  ;;  %v4241_v14 = vld [vmem:[#allocation5 + $0x1ec] sm:$0xf0]  ;;  %v3200_v18 = vor.u32 %v4209_v11, %v3199_v10  ;;  %v3455_v19 = vld [vmem:[#allocation5 + $0x2e0] sm:$0xf]  ;;  %v4239_v10 = vld [vmem:[#allocation5 + $0x1e4] sm:$0xf] }
  0x40   :  { %557 = vmatpush.bf16.msrb.mxu1 %v3029_v23  ;;  %646 = vperm.xlu1 %4442, %v636_v41   ;;  %v4273_v20 = vld [vmem:[#allocation5 + $0x2ec] sm:$0xf0]  ;;  %v3183_v21 = vld [vmem:[#allocation5 + $0xc0] sm:$0xf]  ;;  %v3328_v23 = vor.u32 %v4241_v14, %v3327_v13  ;;  %v3329_v11 = vld [vmem:[#allocation5 + $0x1f0] sm:$0xf0] }
  0x41   :  { %571 = vmatpush.bf16.msrb.mxu2 %v2905_v24  ;;  %v4205_v22 = vld [vmem:[#allocation5 + $0xcc] sm:$0xf0]  ;;  %v3311_v24 = vld [vmem:[#allocation5 + $0x1c0] sm:$0xf]  ;;  %v3456_v26 = vor.u32 %v4273_v20, %v3455_v19  ;;  %v4199_v19 = vld [vmem:[#allocation5 + $0xa4] sm:$0xf] }
  0x42   :  { %585 = vmatpush.bf16.msrb.mxu3 %v3033_v28  ;;  %v4237_v25 = vld [vmem:[#allocation5 + $0x1cc] sm:$0xf0]  ;;  %v3184_v27 = vor.u32 %v4205_v22, %v3183_v21  ;;  %v3439_v28 = vld [vmem:[#allocation5 + $0x2c0] sm:$0xf]  ;;  %v3169_v20 = vld [vmem:[#allocation5 + $0xb0] sm:$0xf0] }
  0x43   :  { %544 = vmatpush.bf16.msrb.mxu0 %v2885_v34  ;;  %v4269_v29 = vld [vmem:[#allocation5 + $0x2cc] sm:$0xf0]  ;;  %v3167_v30 = vld [vmem:[#allocation5 + $0xa0] sm:$0xf]  ;;  %v3312_v32 = vor.u32 %v4237_v25, %v3311_v24  ;;  %v3172_v21 = vor.u32 %v4199_v19, %v3169_v20  ;;  %v4235_v24 = vld [vmem:[#allocation5 + $0x1c4] sm:$0xf] }
  0x44   :  { %558 = vmatpush.bf16.msrb.mxu1 %v3013_v37  ;;  %v4201_v31 = vld [vmem:[#allocation5 + $0xac] sm:$0xf0]  ;;  %v3583_v33 = vld [vmem:[#allocation5 + $0x3e0] sm:$0xf]  ;;  %v3440_v37 = vor.u32 %v4269_v29, %v3439_v28 }
  0x45   :  { %572 = vmatpush.bf16.msrb.mxu2 %v2889_v38  ;;  %v3295_v34 = vld [vmem:[#allocation5 + $0x1a0] sm:$0xf]  ;;  %v4233_v35 = vld [vmem:[#allocation5 + $0x1ac] sm:$0xf0]  ;;  %v3168_v39 = vor.u32 %v4201_v31, %v3167_v30  ;;  %v4195_v30 = vld [vmem:[#allocation5 + $0x84] sm:$0xf] }
  0x46   :  { %586 = vmatpush.bf16.msrb.mxu3 %v3017_v42  ;;  %v4305_v36 = vld [vmem:[#allocation5 + $0x3ec] sm:$0xf0]  ;;  %v3423_v40 = vld [vmem:[#allocation5 + $0x2a0] sm:$0xf]  ;;  %v3296_v44 = vor.u32 %v4233_v35, %v3295_v34 }
  0x47   :  { %545 = vmatpush.bf16.msrb.mxu0 %v2869_v48  ;;  %v3584_v38 = vor.u32 %v4305_v36, %v3583_v33  ;;  %v4265_v41 = vld [vmem:[#allocation5 + $0x2ac] sm:$0xf0]  ;;  %v3151_v42 = vld [vmem:[#allocation5 + $0x80] sm:$0xf]  ;;  %v4231_v36 = vld [vmem:[#allocation5 + $0x1a4] sm:$0xf] }
  0x48   :  { %559 = vmatpush.bf16.msrb.mxu1 %v2997_v49  ;;  %v4197_v43 = vld [vmem:[#allocation5 + $0x8c] sm:$0xf0]  ;;  %v3279_v45 = vld [vmem:[#allocation5 + $0x180] sm:$0xf] }
  0x49   :  { %573 = vmatpush.bf16.msrb.mxu2 %v2873_v50  ;;  %v4229_v46 = vld [vmem:[#allocation5 + $0x18c] sm:$0xf0]  ;;  %v3152_v47 = vor.u32 %v4197_v43, %v3151_v42  ;;  %v3263_v50 = vld [vmem:[#allocation5 + $0x160] sm:$0xf]  ;;  %v4191_v42 = vld [vmem:[#allocation5 + $0x64] sm:$0xf] }
  0x4a   :  { %587 = vmatpush.bf16.msrb.mxu3 %v3001_v55  ;;  %v4193_v48 = vld [vmem:[#allocation5 + $0x6c] sm:$0xf0]  ;;  %v3280_v49 = vor.u32 %v4229_v46, %v3279_v45  ;;  %v3119_v54 = vld [vmem:[#allocation5 + $0x40] sm:$0xf]  ;;  %v3137_v43 = vld [vmem:[#allocation5 + $0x70] sm:$0xf0] }
  0x4b   :  { %546 = vmatpush.bf16.msrb.mxu0 %v2853_v62  ;;  %v4225_v51 = vld [vmem:[#allocation5 + $0x16c] sm:$0xf0]  ;;  %v3247_v58 = vld [vmem:[#allocation5 + $0x140] sm:$0xf]  ;;  %v3140_v45 = vor.u32 %v4191_v42, %v3137_v43 }
  0x4c   :  { %560 = vmatpush.bf16.msrb.mxu1 %v2981_v0  ;;  %v4189_v55 = vld [vmem:[#allocation5 + $0x4c] sm:$0xf0]  ;;  %v3264_v57 = vor.u32 %v4225_v51, %v3263_v50  ;;  %v3103_v61 = vld [vmem:[#allocation5 + $0x20] sm:$0xf] }
  0x4d   :  { %574 = vmatpush.bf16.msrb.mxu2 %v2857_v1  ;;  %v4221_v59 = vld [vmem:[#allocation5 + $0x14c] sm:$0xf0]  ;;  %v3120_v60 = vor.u32 %v4189_v55, %v3119_v54  ;;  %v3231_v0 = vld [vmem:[#allocation5 + $0x120] sm:$0xf]  ;;  %v3121_v55 = vld [vmem:[#allocation5 + $0x50] sm:$0xf0] }
  0x4e   :  { %588 = vmatpush.bf16.msrb.mxu3 %v2985_v5  ;;  %v4185_v62 = vld [vmem:[#allocation5 + $0x2c] sm:$0xf0]  ;;  %v3248_v63 = vor.u32 %v4221_v59, %v3247_v58  ;;  %v3087_v3 = vld [vmem:[#allocation5] sm:$0xf]  ;;  %v4207_v5 = vld [vmem:[#allocation5 + $0xe4] sm:$0xf] }
  0x4f   :  { %547 = vmatpush.bf16.msrb.mxu0 %v2837_v12  ;;  %v4217_v1 = vld [vmem:[#allocation5 + $0x12c] sm:$0xf0]  ;;  %v3104_v2 = vor.u32 %v4185_v62, %v3103_v61  ;;  %v3215_v8 = vld [vmem:[#allocation5 + $0x100] sm:$0xf]  ;;  %v3204_v13 = vor.u32 %v4207_v5, %v3201_v7  ;;  %v3265_v62 = vld [vmem:[#allocation5 + $0x170] sm:$0xf0] }
  0x50   :  { %561 = vmatpush.bf16.msrb.mxu1 %v2965_v15  ;;  %v4181_v4 = vld [vmem:[#allocation5 + $0xc] sm:$0xf0]  ;;  %v3232_v6 = vor.u32 %v4217_v1, %v3231_v0  ;;  %v4203_v15 = vld [vmem:[#allocation5 + $0xc4] sm:$0xf]  ;;  %v3567_v22 = vld [vmem:[#allocation5 + $0x3c0] sm:$0xf] }
  0x51   :  { %575 = vmatpush.bf16.msrb.mxu2 %v2841_v16  ;;  %v4213_v9 = vld [vmem:[#allocation5 + $0x10c] sm:$0xf0]  ;;  %v3088_v12 = vor.u32 %v4181_v4, %v3087_v3  ;;  %v3185_v16 = vld [vmem:[#allocation5 + $0xd0] sm:$0xf0]  ;;  %v3407_v28 = vld [vmem:[#allocation5 + $0x280] sm:$0xf] }
  0x52   :  { %589 = vmatpush.bf16.msrb.mxu3 %v2969_v17  ;;  %548 = vmatmul.bf16.vlgmr.msrb.gmra.mxu0 %v4603_v52  ;;  %v3216_v14 = vor.u32 %v4213_v9, %v3215_v8  ;;  %v3332_v17 = vor.u32 %v4239_v10, %v3329_v11  ;;  %v4261_v29 = vld [vmem:[#allocation5 + $0x28c] sm:$0xf0]  ;;  %v3551_v34 = vld [vmem:[#allocation5 + $0x3a0] sm:$0xf]  ;;  %v3105_v4 = vld [vmem:[#allocation5 + $0x30] sm:$0xf0] }
  0x53   :  { %1457 = vmatpush.bf16.msra.mxu0 %v3200_v18  ;;  %562 = vmatmul.bf16.vlgmr.msrb.gmra.mxu1 %v4605_v56  ;;  %v3188_v18 = vor.u32 %v4203_v15, %v3185_v16  ;;  %v3408_v31 = vor.u32 %v4261_v29, %v3407_v28  ;;  %v4297_v35 = vld [vmem:[#allocation5 + $0x3ac] sm:$0xf0]  ;;  %v3535_v46 = vld [vmem:[#allocation5 + $0x380] sm:$0xf]  ;;  %v4219_v9 = vld [vmem:[#allocation5 + $0x144] sm:$0xf] }
  0x54   :  { %1471 = vmatpush.bf16.msra.mxu1 %v3328_v23  ;;  %576 = vmatmul.bf16.vlgmr.msrb.gmra.mxu2 %v4603_v52  ;;  %v3424_v52 = vor.u32 %v4265_v41, %v3423_v40  ;;  %v4301_v23 = vld [vmem:[#allocation5 + $0x3cc] sm:$0xf0]  ;;  %v3375_v50 = vld [vmem:[#allocation5 + $0x240] sm:$0xf]  ;;  %v3249_v10 = vld [vmem:[#allocation5 + $0x150] sm:$0xf0] }
  0x55   :  { %590 = vmatmul.bf16.vlgmr.msrb.gmra.mxu3 %v4605_v56  ;;  %1485 = vmatpush.bf16.msra.mxu2 %v3456_v26  ;;  %v3135_v56 = vld [vmem:[#allocation5 + $0x60] sm:$0xf]  ;;  %v3568_v25 = vor.u32 %v4301_v23, %v3567_v22  ;;  %v3313_v26 = vld [vmem:[#allocation5 + $0x1d0] sm:$0xf0]  ;;  %v4257_v41 = vld [vmem:[#allocation5 + $0x26c] sm:$0xf0]  ;;  %v3252_v11 = vor.u32 %v4219_v9, %v3249_v10 }
  0x56   :  { %1499 = vmatpush.bf16.msra.mxu3 %v3584_v38  ;;  %v3136_v53 = vor.u32 %v4193_v48, %v3135_v56  ;;  %v3297_v38 = vld [vmem:[#allocation5 + $0x1b0] sm:$0xf0]  ;;  %v4253_v51 = vld [vmem:[#allocation5 + $0x24c] sm:$0xf0]  ;;  %v3519_v58 = vld [vmem:[#allocation5 + $0x360] sm:$0xf] }
  0x57   :  { %1458 = vmatpush.bf16.msra.mxu0 %v3184_v27  ;;  %v3316_v27 = vor.u32 %v4235_v24, %v3313_v26  ;;  %v3300_v40 = vor.u32 %v4231_v36, %v3297_v38  ;;  %v3281_v48 = vld [vmem:[#allocation5 + $0x190] sm:$0xf0]  ;;  %v3376_v54 = vor.u32 %v4253_v51, %v3375_v50  ;;  %v4289_v59 = vld [vmem:[#allocation5 + $0x36c] sm:$0xf0]  ;;  %v3359_v0 = vld [vmem:[#allocation5 + $0x220] sm:$0xf] }
  0x58   :  { %1472 = vmatpush.bf16.msra.mxu1 %v3312_v32  ;;  %v3153_v32 = vld [vmem:[#allocation5 + $0x90] sm:$0xf0]  ;;  %v3520_v61 = vor.u32 %v4289_v59, %v3519_v58  ;;  %v4249_v1 = vld [vmem:[#allocation5 + $0x22c] sm:$0xf0]  ;;  %v3503_v5 = vld [vmem:[#allocation5 + $0x340] sm:$0xf] }
  0x59   :  { %1486 = vmatpush.bf16.msra.mxu2 %v3440_v37  ;;  %v3156_v33 = vor.u32 %v4195_v30, %v3153_v32  ;;  %v3552_v37 = vor.u32 %v4297_v35, %v3551_v34  ;;  %v3360_v3 = vor.u32 %v4249_v1, %v3359_v0  ;;  %v3089_v16 = vld [vmem:[#allocation5 + $0x10] sm:$0xf0]  ;;  %v4281_v22 = vld [vmem:[#allocation5 + $0x32c] sm:$0xf0]  ;;  %v4215_v23 = vld [vmem:[#allocation5 + $0x124] sm:$0xf] }
  0x5a   :  { %1500 = vmatpush.bf16.msra.mxu3 %v3568_v25  ;;  %v3233_v24 = vld [vmem:[#allocation5 + $0x130] sm:$0xf0]  ;;  %v3471_v30 = vld [vmem:[#allocation5 + $0x300] sm:$0xf]  ;;  %v4303_v35 = vld [vmem:[#allocation5 + $0x3e4] sm:$0xf] }
  0x5b   :  { %1459 = vmatpush.bf16.msra.mxu0 %v3168_v39  ;;  %v3391_v39 = vld [vmem:[#allocation5 + $0x260] sm:$0xf]  ;;  %v3236_v26 = vor.u32 %v4215_v23, %v3233_v24  ;;  %v3441_v28 = vld [vmem:[#allocation5 + $0x2d0] sm:$0xf0]  ;;  %v4291_v1 = vld [vmem:[#allocation5 + $0x384] sm:$0xf] }
  0x5c   :  { %1473 = vmatpush.bf16.msra.mxu1 %v3296_v44  ;;  %v3392_v44 = vor.u32 %v4257_v41, %v3391_v39  ;;  %v3217_v34 = vld [vmem:[#allocation5 + $0x110] sm:$0xf0]  ;;  %v4646_v59 = vld [vmem:[%s4767_s6 + $0x2] ss:$8 sm:$0xf] }
  0x5d   :  { %1487 = vmatpush.bf16.msra.mxu2 %v3424_v52  ;;  %v4293_v52 = vld [vmem:[#allocation5 + $0x38c] sm:$0xf0]  ;;  %v4630_v36 = vld [vmem:[%s4767_s6] ss:$8 sm:$0xf]  ;;  %v650_v0 = vperm.slane %v4646_v59, 0 }
  0x5e   :  { %1501 = vmatpush.bf16.msra.mxu3 %v3552_v37  ;;  %v3536_v56 = vor.u32 %v4293_v52, %v3535_v46  ;;  %v3585_v38 = vld [vmem:[#allocation5 + $0x3f0] sm:$0xf0]  ;;  %v146_v46 = vperm.slane %v4630_v36, 0  ;;  %v4638_v52 = vld [vmem:[%s4767_s6 + $0x1] ss:$8 sm:$0xf] }
  0x5f   :  { %1460 = vmatpush.bf16.msra.mxu0 %v3152_v47  ;;  %v4227_v47 = vld [vmem:[#allocation5 + $0x184] sm:$0xf]  ;;  %v3588_v39 = vor.u32 %v4303_v35, %v3585_v38  ;;  %v3425_v41 = vld [vmem:[#allocation5 + $0x2b0] sm:$0xf0]  ;;  %v611_v58 = vperm.slane %v4638_v52, 0 }
  0x60   :  { %1474 = vmatpush.bf16.msra.mxu1 %v3280_v49  ;;  %v3284_v49 = vor.u32 %v4227_v47, %v3281_v48  ;;  %v4259_v48 = vld [vmem:[#allocation5 + $0x284] sm:$0xf]  ;;  %v3377_v9 = vld [vmem:[#allocation5 + $0x250] sm:$0xf0] }
  0x61   :  { %1488 = vmatpush.bf16.msra.mxu2 %v3408_v31  ;;  %v4277_v31 = vld [vmem:[#allocation5 + $0x30c] sm:$0xf0]  ;;  %v4283_v35 = vld [vmem:[#allocation5 + $0x344] sm:$0xf] }
  0x62   :  { %1502 = vmatpush.bf16.msra.mxu3 %v3536_v56  ;;  %v3472_v32 = vor.u32 %v4277_v31, %v3471_v30  ;;  %v3207_v30 = vld [vmem:[#allocation5 + $0xe8] sm:$0xf] }
  0x63   :  { %1461 = vmatpush.bf16.msra.mxu0 %v3136_v53  ;;  %v4187_v53 = vld [vmem:[#allocation5 + $0x44] sm:$0xf] }
  0x64   :  { %1475 = vmatpush.bf16.msra.mxu1 %v3264_v57  ;;  %v3124_v57 = vor.u32 %v4187_v53, %v3121_v55  ;;  %v4295_v53 = vld [vmem:[#allocation5 + $0x3a4] sm:$0xf] }
  0x65   :  { %1489 = vmatpush.bf16.msra.mxu2 %v3392_v44  ;;  %v4299_v44 = vld [vmem:[#allocation5 + $0x3c4] sm:$0xf] }
  0x66   :  { %1503 = vmatpush.bf16.msra.mxu3 %v3520_v61  ;;  %v4255_v61 = vld [vmem:[#allocation5 + $0x264] sm:$0xf] }
  0x67   :  { %1462 = vmatpush.bf16.msra.mxu0 %v3120_v60  ;;  %v4223_v60 = vld [vmem:[#allocation5 + $0x164] sm:$0xf] }
  0x68   :  { %1476 = vmatpush.bf16.msra.mxu1 %v3248_v63  ;;  %v3268_v63 = vor.u32 %v4223_v60, %v3265_v62  ;;  %v3393_v62 = vld [vmem:[#allocation5 + $0x270] sm:$0xf0] }
  0x69   :  { %1490 = vmatpush.bf16.msra.mxu2 %v3376_v54  ;;  %v3553_v54 = vld [vmem:[#allocation5 + $0x3b0] sm:$0xf0] }
  0x6a   :  { %v3556_v60 = vor.u32 %v4295_v53, %v3553_v54  ;;  %v4279_v54 = vld [vmem:[#allocation5 + $0x324] sm:$0xf] }
  0x6b   :  { %1463 = vmatpush.bf16.msra.mxu0 %v3104_v2  ;;  %v4183_v2 = vld [vmem:[#allocation5 + $0x24] sm:$0xf] }
  0x6c   :  { %1477 = vmatpush.bf16.msra.mxu1 %v3232_v6  ;;  %v4285_v6 = vld [vmem:[#allocation5 + $0x34c] sm:$0xf0]  ;;  %v3108_v7 = vor.u32 %v4183_v2, %v3105_v4  ;;  %v3537_v2 = vld [vmem:[#allocation5 + $0x390] sm:$0xf0] }
  0x6d   :  { %v3504_v8 = vor.u32 %v4285_v6, %v3503_v5  ;;  %1491 = vmatpush.bf16.msra.mxu2 %v3360_v3  ;;  %v3396_v5 = vor.u32 %v4255_v61, %v3393_v62 }
  0x6f   :  { %1464 = vmatpush.bf16.msra.mxu0 %v3088_v12  ;;  %v3343_v12 = vld [vmem:[#allocation5 + $0x200] sm:$0xf]  ;;  %1504 = vmatpush.bf16.msra.mxu3 %v3504_v8  ;;  %v4251_v8 = vld [vmem:[#allocation5 + $0x244] sm:$0xf] }
  0x70   :  { %1478 = vmatpush.bf16.msra.mxu1 %v3216_v14  ;;  %v4179_v14 = vld [vmem:[#allocation5 + $0x4] sm:$0xf] }
  0x71   :  { %v3092_v19 = vor.u32 %v4179_v14, %v3089_v16  ;;  %v612_v16 = vperm.slane %v4638_v52, 1 }
  0x73   :  { %1513 = vmatpush.bf16.msrb.mxu0 %v3204_v13  ;;  %v4245_v13 = vld [vmem:[#allocation5 + $0x20c] sm:$0xf0] }
  0x74   :  { %1527 = vmatpush.bf16.msrb.mxu1 %v3332_v17  ;;  %v3344_v15 = vor.u32 %v4245_v13, %v3343_v12  ;;  %v4271_v17 = vld [vmem:[#allocation5 + $0x2e4] sm:$0xf]  ;;  %v3380_v12 = vor.u32 %v4251_v8, %v3377_v9  ;;  %v3175_v8 = vld [vmem:[#allocation5 + $0xa8] sm:$0xf]  ;;  %v4202_v9 = vld [vmem:[#allocation5 + $0xb4] sm:$0xf0] }
  0x76   :  { %1492 = vmatpush.bf16.msra.mxu2 %v3344_v15 }
  0x77   :  { %1514 = vmatpush.bf16.msrb.mxu0 %v3188_v18  ;;  %v3457_v18 = vld [vmem:[#allocation5 + $0x2f0] sm:$0xf0] }
  0x78   :  { %1528 = vmatpush.bf16.msrb.mxu1 %v3316_v27  ;;  %v3460_v20 = vor.u32 %v4271_v17, %v3457_v18  ;;  %v4267_v27 = vld [vmem:[#allocation5 + $0x2c4] sm:$0xf] }
  0x79   :  { %v3444_v29 = vor.u32 %v4267_v27, %v3441_v28  ;;  %v4287_v18 = vld [vmem:[#allocation5 + $0x364] sm:$0xf]  ;;  %v651_v27 = vperm.slane %v4646_v59, 1 }
  0x7a   :  { %1541 = vmatpush.bf16.msrb.mxu2 %v3460_v20 }
  0x7b   :  { %1515 = vmatpush.bf16.msrb.mxu0 %v3172_v21  ;;  %v3487_v21 = vld [vmem:[#allocation5 + $0x320] sm:$0xf] }
  0x7c   :  { %1529 = vmatpush.bf16.msrb.mxu1 %v3300_v40  ;;  %v3488_v25 = vor.u32 %v4281_v22, %v3487_v21  ;;  %v4263_v40 = vld [vmem:[#allocation5 + $0x2a4] sm:$0xf] }
  0x7d   :  { %v3428_v42 = vor.u32 %v4263_v40, %v3425_v41  ;;  %v4243_v41 = vld [vmem:[#allocation5 + $0x204] sm:$0xf] }
  0x7e   :  { %1505 = vmatpush.bf16.msra.mxu3 %v3488_v25  ;;  %1542 = vmatpush.bf16.msrb.mxu2 %v3444_v29  ;;  %v4247_v25 = vld [vmem:[#allocation5 + $0x224] sm:$0xf] }
  0x7f   :  { %1516 = vmatpush.bf16.msrb.mxu0 %v3156_v33  ;;  %v4211_v33 = vld [vmem:[#allocation5 + $0x104] sm:$0xf] }
  0x80   :  { %1530 = vmatpush.bf16.msrb.mxu1 %v3284_v49  ;;  %v3220_v37 = vor.u32 %v4211_v33, %v3217_v34  ;;  %v3409_v49 = vld [vmem:[#allocation5 + $0x290] sm:$0xf0]  ;;  %v4210_v34 = vld [vmem:[#allocation5 + $0xf4] sm:$0xf0] }
  0x81   :  { %v3412_v50 = vor.u32 %v4259_v48, %v3409_v49 }
  0x82   :  { %1506 = vmatpush.bf16.msra.mxu3 %v3472_v32  ;;  %1543 = vmatpush.bf16.msrb.mxu2 %v3428_v42  ;;  %v3345_v42 = vld [vmem:[#allocation5 + $0x210] sm:$0xf0] }
  0x83   :  { %1517 = vmatpush.bf16.msrb.mxu0 %v3140_v45  ;;  %v3569_v45 = vld [vmem:[#allocation5 + $0x3d0] sm:$0xf0] }
  0x84   :  { %1531 = vmatpush.bf16.msrb.mxu1 %v3268_v63  ;;  %v3572_v56 = vor.u32 %v4299_v44, %v3569_v45  ;;  %v147_v63 = vperm.slane %v4630_v36, 1 }
  0x86   :  { %1555 = vmatpush.bf16.msrb.mxu3 %v3588_v39  ;;  %1544 = vmatpush.bf16.msrb.mxu2 %v3412_v50 }
  0x87   :  { %1518 = vmatpush.bf16.msrb.mxu0 %v3124_v57 }
  0x88   :  { %1532 = vmatpush.bf16.msrb.mxu1 %v3252_v11 }
  0x8a   :  { %1556 = vmatpush.bf16.msrb.mxu3 %v3572_v56  ;;  %1545 = vmatpush.bf16.msrb.mxu2 %v3396_v5  ;;  %v3348_v56 = vor.u32 %v4243_v41, %v3345_v42  ;;  %v4275_v5 = vld [vmem:[#allocation5 + $0x304] sm:$0xf] }
  0x8b   :  { %1519 = vmatpush.bf16.msrb.mxu0 %v3108_v7  ;;  %v3540_v7 = vor.u32 %v4291_v1, %v3537_v2  ;;  %v3335_v1 = vld [vmem:[#allocation5 + $0x1e8] sm:$0xf] }
  0x8c   :  { %1533 = vmatpush.bf16.msrb.mxu1 %v3236_v26  ;;  %v3361_v26 = vld [vmem:[#allocation5 + $0x230] sm:$0xf0] }
  0x8d   :  { %v3364_v31 = vor.u32 %v4247_v25, %v3361_v26  ;;  %v3143_v26 = vld [vmem:[#allocation5 + $0x68] sm:$0xf] }
  0x8e   :  { %1557 = vmatpush.bf16.msrb.mxu3 %v3556_v60  ;;  %1546 = vmatpush.bf16.msrb.mxu2 %v3380_v12  ;;  %v3489_v60 = vld [vmem:[#allocation5 + $0x330] sm:$0xf0] }
  0x8f   :  { %1520 = vmatpush.bf16.msrb.mxu0 %v3092_v19  ;;  %v3521_v19 = vld [vmem:[#allocation5 + $0x370] sm:$0xf0] }
  0x90   :  { %1534 = vmatpush.bf16.msrb.mxu1 %v3220_v37  ;;  %v3524_v24 = vor.u32 %v4287_v18, %v3521_v19  ;;  %v3505_v37 = vld [vmem:[#allocation5 + $0x350] sm:$0xf0]  ;;  %v3159_v18 = vld [vmem:[#allocation5 + $0x88] sm:$0xf]  ;;  %v4198_v19 = vld [vmem:[#allocation5 + $0x94] sm:$0xf0] }
  0x91   :  { %v3508_v40 = vor.u32 %v4283_v35, %v3505_v37  ;;  %v3127_v35 = vld [vmem:[#allocation5 + $0x48] sm:$0xf]  ;;  %v4190_v37 = vld [vmem:[#allocation5 + $0x54] sm:$0xf0] }
  0x92   :  { %1558 = vmatpush.bf16.msrb.mxu3 %v3540_v7  ;;  %1547 = vmatpush.bf16.msrb.mxu2 %v3364_v31  ;;  %v3473_v7 = vld [vmem:[#allocation5 + $0x310] sm:$0xf0] }
  0x96   :  { %1559 = vmatpush.bf16.msrb.mxu3 %v3524_v24  ;;  %1548 = vmatpush.bf16.msrb.mxu2 %v3348_v56  ;;  %v4234_v24 = vld [vmem:[#allocation5 + $0x1b4] sm:$0xf0] }
  0x97   :  { %v4226_v56 = vld [vmem:[#allocation5 + $0x174] sm:$0xf0] }
  0x9a   :  { %1560 = vmatpush.bf16.msrb.mxu3 %v3508_v40 }
  0xa8   :  { %v4632_v43 = vpop.permute.xlu0 %602 }
  0xa9   :  { %v619_v4 = vmul.f32 %v611_v58, %v4632_v43  ;;  %v620_v33 = vmul.f32 %v612_v16, %v4632_v43 }
  0xaa   :  { %v4640_v47 = vpop.permute.xlu1 %641 }
  0xab   :  { %v658_v17 = vmul.f32 %v650_v0, %v4640_v47  ;;  %v659_v49 = vmul.f32 %v651_v27, %v4640_v47 }
  0xaf   :  { %v493_v51 = vpop.f32.mrf.mxu0 }
  0xb0   :  { %v494_v55 = vadd.f32 %v493_v51, %v146_v46  ;;  %v507_v57 = vpop.f32.mrf.mxu1  ;;  %v4651_v6 = vpop.permute.xlu0 %607 }
  0xb1   :  { %v623_v22 = vmul.f32 %v611_v58, %v4651_v6  ;;  %v624_v50 = vmul.f32 %v612_v16, %v4651_v6  ;;  %v4206_v58 = vld [vmem:[#allocation5 + $0xd4] sm:$0xf0]  ;;  %v3319_v16 = vld [vmem:[#allocation5 + $0x1c8] sm:$0xf] }
  0xb2   :  { %v508_v3 = vadd.f32 %v507_v57, %v494_v55  ;;  %v4653_v11 = vpop.permute.xlu1 %646  ;;  %v3191_v57 = vld [vmem:[#allocation5 + $0xc8] sm:$0xf] }
  0xb3   :  { %v662_v29 = vmul.f32 %v650_v0, %v4653_v11  ;;  %v663_v61 = vmul.f32 %v651_v27, %v4653_v11  ;;  %v3492_v0 = vor.u32 %v4279_v54, %v3489_v60  ;;  %v4194_v27 = vld [vmem:[#allocation5 + $0x74] sm:$0xf0]  ;;  %v614_v54 = vperm.slane %v4638_v52, 3 }
  0xb4   :  { %v627_v20 = vadd.f32 %v619_v4, %v508_v3  ;;  %v4242_v4 = vld [vmem:[#allocation5 + $0x1f4] sm:$0xf0] }
  0xb5   :  { %1561 = vmatpush.bf16.msrb.mxu3 %v3492_v0 }
  0xb6   :  { %v666_v39 = vadd.f32 %v658_v17, %v627_v20  ;;  %v4238_v17 = vld [vmem:[#allocation5 + $0x1d4] sm:$0xf0] }
  0xb7   :  { %v521_v10 = vpop.f32.mrf.mxu2  ;;  %v495_v14 = vpop.f32.mrf.mxu0  ;;  %v3320_v20 = vor.u32 %v4238_v17, %v3319_v16 }
  0xb8   :  { %v522_v13 = vadd.f32 %v521_v10, %v147_v63  ;;  %v535_v15 = vpop.f32.mrf.mxu3  ;;  %v496_v21 = vadd.f32 %v495_v14, %v146_v46  ;;  %v509_v23 = vpop.f32.mrf.mxu1  ;;  %v3208_v46 = vor.u32 %v4210_v34, %v3207_v30  ;;  %v3476_v10 = vor.u32 %v4275_v5, %v3473_v7  ;;  %v4230_v34 = vld [vmem:[#allocation5 + $0x194] sm:$0xf0]  ;;  %v3463_v5 = vld [vmem:[#allocation5 + $0x2e8] sm:$0xf] }
  0xb9   :  { %v613_v30 = vperm.slane %v4638_v52, 2 }
  0xba   :  { %v510_v28 = vadd.f32 %v509_v23, %v496_v21  ;;  %v536_v32 = vadd.f32 %v535_v15, %v522_v13  ;;  %v3336_v13 = vor.u32 %v4242_v4, %v3335_v1  ;;  %v3176_v15 = vor.u32 %v4202_v9, %v3175_v8  ;;  %1562 = vmatpush.bf16.msrb.mxu3 %v3476_v10  ;;  %v3303_v23 = vld [vmem:[#allocation5 + $0x1a8] sm:$0xf]  ;;  %v4182_v4 = vld [vmem:[#allocation5 + $0x14] sm:$0xf0]  ;;  %v4208_v9 = vld [vmem:[#allocation5 + $0xec] sm:$0xf] }
  0xbb   :  { %v148_v21 = vperm.slane %v4630_v36, 2  ;;  %v621_v42 = vmul.f32 %v613_v30, %v4632_v43  ;;  %v4274_v8 = vld [vmem:[#allocation5 + $0x2f4] sm:$0xf0]  ;;  %v3209_v10 = vld [vmem:[#allocation5 + $0xf8] sm:$0xf0] }
  0xbc   :  { %v631_v38 = vadd.f32 %v623_v22, %v510_v28  ;;  %v628_v48 = vadd.f32 %v620_v33, %v536_v32  ;;  %v3160_v22 = vor.u32 %v4198_v19, %v3159_v18  ;;  %v3144_v32 = vor.u32 %v4194_v27, %v3143_v26  ;;  %v3287_v33 = vld [vmem:[#allocation5 + $0x188] sm:$0xf] }
  0xbd   :  { %v3288_v40 = vor.u32 %v4230_v34, %v3287_v33  ;;  %v3447_v26 = vld [vmem:[#allocation5 + $0x2c8] sm:$0xf] }
  0xbe   :  { %v670_v44 = vadd.f32 %v662_v29, %v631_v38  ;;  %v667_v2 = vadd.f32 %v659_v49, %v628_v48  ;;  %v3304_v29 = vor.u32 %v4234_v24, %v3303_v23  ;;  %v652_v38 = vperm.slane %v4646_v59, 2 }
  0xbf   :  { %v523_v45 = vpop.f32.mrf.mxu2  ;;  %v3464_v24 = vor.u32 %v4274_v8, %v3463_v5  ;;  %v3559_v5 = vld [vmem:[#allocation5 + $0x3a8] sm:$0xf]  ;;  %v4298_v8 = vld [vmem:[#allocation5 + $0x3b4] sm:$0xf0] }
  0xc0   :  { %v524_v51 = vadd.f32 %v523_v45, %v147_v63  ;;  %v537_v53 = vpop.f32.mrf.mxu3  ;;  %v4663_v55 = vpack.c.bf16 %v670_v44, %v666_v39  ;;  %v3192_v63 = vor.u32 %v4206_v58, %v3191_v57  ;;  %v149_v39 = vperm.slane %v4630_v36, 3 }
  0xc1   :  { %v3128_v45 = vor.u32 %v4190_v37, %v3127_v35  ;;  %v660_v36 = vmul.f32 %v652_v38, %v4640_v47  ;;  %v664_v7 = vmul.f32 %v652_v38, %v4653_v11  ;;  %v3223_v35 = vld [vmem:[#allocation5 + $0x108] sm:$0xf]  ;;  %v4214_v38 = vld [vmem:[#allocation5 + $0x114] sm:$0xf0] }
  0xc2   :  { %v538_v62 = vadd.f32 %v537_v53, %v524_v51  ;;  %1465 = vmatmul.bf16.vlgmr.msra.gmra.mxu0 %v4663_v55  ;;  %v4186_v51 = vld [vmem:[#allocation5 + $0x34] sm:$0xf0] }
  0xc3   :  { %1569 = vmatpush.bf16.msra.mxu0 %v3208_v46  ;;  %v3271_v46 = vld [vmem:[#allocation5 + $0x168] sm:$0xf] }
  0xc4   :  { %v632_v3 = vadd.f32 %v624_v50, %v538_v62  ;;  %v3111_v50 = vld [vmem:[#allocation5 + $0x28] sm:$0xf]  ;;  %v3272_v60 = vor.u32 %v4226_v56, %v3271_v46  ;;  %v4266_v56 = vld [vmem:[#allocation5 + $0x2b4] sm:$0xf0] }
  0xc5   :  { %v3112_v1 = vor.u32 %v4186_v51, %v3111_v50  ;;  %v3431_v46 = vld [vmem:[#allocation5 + $0x2a8] sm:$0xf] }
  0xc6   :  { %v671_v12 = vadd.f32 %v663_v61, %v632_v3  ;;  %v625_v61 = vmul.f32 %v613_v30, %v4651_v6  ;;  %v4222_v3 = vld [vmem:[#allocation5 + $0x154] sm:$0xf0]  ;;  %v4204_v30 = vld [vmem:[#allocation5 + $0xcc] sm:$0xf] }
  0xc7   :  { %1570 = vmatpush.bf16.msra.mxu0 %v3192_v63  ;;  %v3095_v63 = vld [vmem:[#allocation5 + $0x8] sm:$0xf] }
  0xc8   :  { %v4667_v14 = vpack.c.bf16 %v671_v12, %v667_v2  ;;  %v3255_v2 = vld [vmem:[#allocation5 + $0x148] sm:$0xf]  ;;  %v3096_v19 = vor.u32 %v4182_v4, %v3095_v63 }
  0xca   :  { %1479 = vmatmul.bf16.vlgmr.msra.gmra.mxu1 %v4667_v14 }
  0xcb   :  { %1583 = vmatpush.bf16.msra.mxu1 %v3336_v13  ;;  %1571 = vmatpush.bf16.msra.mxu0 %v3176_v15  ;;  %v3256_v13 = vor.u32 %v4222_v3, %v3255_v2  ;;  %v653_v15 = vperm.slane %v4646_v59, 3  ;;  %v626_v59 = vmul.f32 %v614_v54, %v4651_v6  ;;  %v4196_v2 = vld [vmem:[#allocation5 + $0x8c] sm:$0xf]  ;;  %v3161_v3 = vld [vmem:[#allocation5 + $0x98] sm:$0xf0] }
  0xcd   :  { %v665_v37 = vmul.f32 %v653_v15, %v4653_v11 }
  0xcf   :  { %v549_v25 = vpop.f32.mrf.mxu0  ;;  %1584 = vmatpush.bf16.msra.mxu1 %v3320_v20  ;;  %1572 = vmatpush.bf16.msra.mxu0 %v3160_v22  ;;  %v3239_v20 = vld [vmem:[#allocation5 + $0x128] sm:$0xf]  ;;  %v622_v22 = vmul.f32 %v614_v54, %v4632_v43  ;;  %v661_v43 = vmul.f32 %v653_v15, %v4640_v47  ;;  %v3224_v47 = vor.u32 %v4214_v38, %v3223_v35  ;;  %v3273_v35 = vld [vmem:[#allocation5 + $0x178] sm:$0xf0] }
  0xd0   :  { %v563_v28 = vpop.f32.mrf.mxu1  ;;  %v550_v31 = vadd.f32 %v549_v25, %v148_v21  ;;  %v3212_v25 = vor.u32 %v4208_v9, %v3209_v10  ;;  %v3575_v54 = vld [vmem:[#allocation5 + $0x3c8] sm:$0xf]  ;;  %v4232_v9 = vld [vmem:[#allocation5 + $0x1ac] sm:$0xf]  ;;  %v3305_v10 = vld [vmem:[#allocation5 + $0x1b8] sm:$0xf0] }
  0xd1   :  { %v3399_v15 = vld [vmem:[#allocation5 + $0x268] sm:$0xf]  ;;  %v3113_v38 = vld [vmem:[#allocation5 + $0x38] sm:$0xf0] }
  0xd2   :  { %1521 = vmatmul.bf16.vlgmr.msrb.gmra.mxu0 %v4663_v55  ;;  %v564_v41 = vadd.f32 %v563_v28, %v550_v31  ;;  %v3193_v31 = vld [vmem:[#allocation5 + $0xd8] sm:$0xf0] }
  0xd3   :  { %1585 = vmatpush.bf16.msra.mxu1 %v3304_v29  ;;  %1573 = vmatpush.bf16.msra.mxu0 %v3144_v32  ;;  %v4270_v29 = vld [vmem:[#allocation5 + $0x2d4] sm:$0xf0]  ;;  %v3196_v6 = vor.u32 %v4204_v30, %v3193_v31 }
  0xd4   :  { %v629_v62 = vadd.f32 %v621_v42, %v564_v41  ;;  %v3448_v42 = vor.u32 %v4270_v29, %v3447_v26  ;;  %v3129_v26 = vld [vmem:[#allocation5 + $0x58] sm:$0xf0]  ;;  %v4254_v29 = vld [vmem:[#allocation5 + $0x254] sm:$0xf0] }
  0xd6   :  { %v668_v16 = vadd.f32 %v660_v36, %v629_v62  ;;  %v4302_v36 = vld [vmem:[#allocation5 + $0x3d4] sm:$0xf0]  ;;  %v3321_v62 = vld [vmem:[#allocation5 + $0x1d8] sm:$0xf0] }
  0xd7   :  { %v577_v44 = vpop.f32.mrf.mxu2  ;;  %v551_v49 = vpop.f32.mrf.mxu0  ;;  %1586 = vmatpush.bf16.msra.mxu1 %v3288_v40  ;;  %1574 = vmatpush.bf16.msra.mxu0 %v3128_v45  ;;  %v4306_v40 = vld [vmem:[#allocation5 + $0x3f4] sm:$0xf0]  ;;  %v3337_v45 = vld [vmem:[#allocation5 + $0x1f8] sm:$0xf0]  ;;  %v3576_v63 = vor.u32 %v4302_v36, %v3575_v54  ;;  %v4272_v54 = vld [vmem:[#allocation5 + $0x2ec] sm:$0xf] }
  0xd8   :  { %v591_v48 = vpop.f32.mrf.mxu3  ;;  %v552_v53 = vadd.f32 %v551_v49, %v148_v21  ;;  %v578_v57 = vadd.f32 %v577_v44, %v149_v39  ;;  %v565_v58 = vpop.f32.mrf.mxu1  ;;  %v4218_v21 = vld [vmem:[#allocation5 + $0x134] sm:$0xf0]  ;;  %v4240_v44 = vld [vmem:[#allocation5 + $0x1ec] sm:$0xf]  ;;  %v3177_v49 = vld [vmem:[#allocation5 + $0xb8] sm:$0xf0] }
  0xd9   :  { %v3240_v34 = vor.u32 %v4218_v21, %v3239_v20  ;;  %v4294_v21 = vld [vmem:[#allocation5 + $0x394] sm:$0xf0]  ;;  %v3465_v36 = vld [vmem:[#allocation5 + $0x2f8] sm:$0xf0] }
  0xda   :  { %v566_v0 = vadd.f32 %v565_v58, %v552_v53  ;;  %1535 = vmatmul.bf16.vlgmr.msrb.gmra.mxu1 %v4667_v14  ;;  %v592_v12 = vadd.f32 %v591_v48, %v578_v57  ;;  %v4200_v48 = vld [vmem:[#allocation5 + $0xac] sm:$0xf]  ;;  %v3340_v53 = vor.u32 %v4240_v44, %v3337_v45  ;;  %v3432_v58 = vor.u32 %v4266_v56, %v3431_v46  ;;  %v4286_v45 = vld [vmem:[#allocation5 + $0x354] sm:$0xf0]  ;;  %v3257_v56 = vld [vmem:[#allocation5 + $0x158] sm:$0xf0] }
  0xdb   :  { %1587 = vmatpush.bf16.msra.mxu1 %v3272_v60  ;;  %1575 = vmatpush.bf16.msra.mxu0 %v3112_v1  ;;  %v3180_v60 = vor.u32 %v4200_v48, %v3177_v49  ;;  %v4262_v1 = vld [vmem:[#allocation5 + $0x294] sm:$0xf0]  ;;  %v4220_v46 = vld [vmem:[#allocation5 + $0x14c] sm:$0xf] }
  0xdc   :  { %v633_v52 = vadd.f32 %v625_v61, %v566_v0  ;;  %v630_v32 = vadd.f32 %v622_v22, %v592_v12  ;;  %v4236_v61 = vld [vmem:[#allocation5 + $0x1cc] sm:$0xf]  ;;  %v3415_v0 = vld [vmem:[#allocation5 + $0x288] sm:$0xf] }
  0xdd   :  { %v3324_v4 = vor.u32 %v4236_v61, %v3321_v62  ;;  %v4192_v12 = vld [vmem:[#allocation5 + $0x6c] sm:$0xf]  ;;  %v4282_v61 = vld [vmem:[#allocation5 + $0x334] sm:$0xf0] }
  0xde   :  { %v672_v17 = vadd.f32 %v664_v7, %v633_v52  ;;  %v669_v11 = vadd.f32 %v661_v43, %v630_v32  ;;  %v3416_v7 = vor.u32 %v4262_v1, %v3415_v0  ;;  %v3164_v52 = vor.u32 %v4196_v2, %v3161_v3  ;;  %v4228_v22 = vld [vmem:[#allocation5 + $0x18c] sm:$0xf]  ;;  %v3241_v0 = vld [vmem:[#allocation5 + $0x138] sm:$0xf0] }
  0xdf   :  { %v579_v18 = vpop.f32.mrf.mxu2  ;;  %1588 = vmatpush.bf16.msra.mxu1 %v3256_v13  ;;  %1576 = vmatpush.bf16.msra.mxu0 %v3096_v19  ;;  %v3145_v13 = vld [vmem:[#allocation5 + $0x78] sm:$0xf0]  ;;  %v3543_v19 = vld [vmem:[#allocation5 + $0x388] sm:$0xf]  ;;  %v4184_v43 = vld [vmem:[#allocation5 + $0x2c] sm:$0xf]  ;;  %v3468_v2 = vor.u32 %v4272_v54, %v3465_v36 }
  0xe0   :  { %v580_v23 = vadd.f32 %v579_v18, %v149_v39  ;;  %v4683_v27 = vpack.c.bf16 %v672_v17, %v668_v16  ;;  %v593_v28 = vpop.f32.mrf.mxu3  ;;  %v3591_v39 = vld [vmem:[#allocation5 + $0x3e8] sm:$0xf]  ;;  %v4258_v16 = vld [vmem:[#allocation5 + $0x274] sm:$0xf0]  ;;  %v3560_v17 = vor.u32 %v4298_v8, %v3559_v5  ;;  %v3308_v18 = vor.u32 %v4232_v9, %v3305_v10  ;;  %v4180_v49 = vld [vmem:[#allocation5 + $0xc] sm:$0xf] }
  0xe1   :  { %v3592_v51 = vor.u32 %v4306_v40, %v3591_v39  ;;  %v3148_v20 = vor.u32 %v4192_v12, %v3145_v13  ;;  %v3544_v30 = vor.u32 %v4294_v21, %v3543_v19  ;;  %v3367_v39 = vld [vmem:[#allocation5 + $0x228] sm:$0xf]  ;;  %v4250_v40 = vld [vmem:[#allocation5 + $0x234] sm:$0xf0]  ;;  %v3116_v44 = vor.u32 %v4184_v43, %v3113_v38  ;;  %v4216_v62 = vld [vmem:[#allocation5 + $0x12c] sm:$0xf] }
  0xe2   :  { %v594_v33 = vadd.f32 %v593_v28, %v580_v23  ;;  %1493 = vmatmul.bf16.vlgmr.msra.gmra.mxu2 %v4683_v27  ;;  %1577 = vmatmul.bf16.vlgmr.msra.gmra.mxu0 %v4663_v55  ;;  %v3289_v23 = vld [vmem:[#allocation5 + $0x198] sm:$0xf0]  ;;  %v3383_v28 = vld [vmem:[#allocation5 + $0x248] sm:$0xf]  ;;  %v3368_v48 = vor.u32 %v4250_v40, %v3367_v39  ;;  %v4212_v8 = vld [vmem:[#allocation5 + $0x10c] sm:$0xf] }
  0xe3   :  { %1597 = vmatpush.bf16.msra.mxu2 %v3464_v24  ;;  %1625 = vmatpush.bf16.msrb.mxu0 %v3212_v25  ;;  %v3400_v24 = vor.u32 %v4258_v16, %v3399_v15  ;;  %v4188_v25 = vld [vmem:[#allocation5 + $0x4c] sm:$0xf]  ;;  %v3292_v31 = vor.u32 %v4228_v22, %v3289_v23  ;;  %v3449_v5 = vld [vmem:[#allocation5 + $0x2d8] sm:$0xf0] }
  0xe4   :  { %v634_v41 = vadd.f32 %v626_v59, %v594_v33  ;;  %1589 = vmatpush.bf16.msra.mxu1 %v3240_v34  ;;  %v3527_v59 = vld [vmem:[#allocation5 + $0x368] sm:$0xf]  ;;  %v3132_v32 = vor.u32 %v4188_v25, %v3129_v26  ;;  %v4290_v33 = vld [vmem:[#allocation5 + $0x374] sm:$0xf0]  ;;  %v4224_v34 = vld [vmem:[#allocation5 + $0x16c] sm:$0xf] }
  0xe5   :  { %v3225_v9 = vld [vmem:[#allocation5 + $0x118] sm:$0xf0]  ;;  %v4304_v10 = vld [vmem:[#allocation5 + $0x3ec] sm:$0xf]  ;;  %v3712_v25 = vld [vmem:[#allocation7 + $0xe0] sm:$0xf] }
  0xe6   :  { %v673_v50 = vadd.f32 %v665_v37, %v634_v41  ;;  %v3384_v37 = vor.u32 %v4254_v29, %v3383_v28  ;;  %v3528_v41 = vor.u32 %v4290_v33, %v3527_v59  ;;  %v3593_v12 = vld [vmem:[#allocation5 + $0x3f8] sm:$0xf0]  ;;  %v3228_v16 = vor.u32 %v4212_v8, %v3225_v9  ;;  %v4260_v23 = vld [vmem:[#allocation5 + $0x28c] sm:$0xf]  ;;  %v4337_v26 = vld [vmem:[#allocation7 + $0xec] sm:$0xf0] }
  0xe7   :  { %1598 = vmatpush.bf16.msra.mxu2 %v3448_v42  ;;  %1626 = vmatpush.bf16.msrb.mxu0 %v3196_v6  ;;  %v3276_v42 = vor.u32 %v4224_v34, %v3273_v35  ;;  %v3511_v6 = vld [vmem:[#allocation5 + $0x348] sm:$0xf]  ;;  %v3596_v19 = vor.u32 %v4304_v10, %v3593_v12  ;;  %v3577_v21 = vld [vmem:[#allocation5 + $0x3d8] sm:$0xf0]  ;;  %v3713_v29 = vor.u32 %v4337_v26, %v3712_v25  ;;  %v4256_v59 = vld [vmem:[#allocation5 + $0x26c] sm:$0xf] }
  0xe8   :  { %v4690_v57 = vpack.c.bf16 %v673_v50, %v669_v11  ;;  %1590 = vmatpush.bf16.msra.mxu1 %v3224_v47  ;;  %v3097_v11 = vld [vmem:[#allocation5 + $0x18] sm:$0xf0]  ;;  %v3351_v50 = vld [vmem:[#allocation5 + $0x208] sm:$0xf]  ;;  %v4246_v47 = vld [vmem:[#allocation5 + $0x214] sm:$0xf0] }
  0xe9   :  { %v3352_v1 = vor.u32 %v4246_v47, %v3351_v50  ;;  %v4292_v34 = vld [vmem:[#allocation5 + $0x38c] sm:$0xf]  ;;  %v3545_v35 = vld [vmem:[#allocation5 + $0x398] sm:$0xf0]  ;;  %v3632_v10 = vld [vmem:[#allocation7 + $0x40] sm:$0xf] }
  0xea   :  { %1507 = vmatmul.bf16.vlgmr.msra.gmra.mxu3 %v4690_v57  ;;  %v4252_v43 = vld [vmem:[#allocation5 + $0x24c] sm:$0xf]  ;;  %v3385_v38 = vld [vmem:[#allocation5 + $0x258] sm:$0xf0]  ;;  %v3548_v39 = vor.u32 %v4292_v34, %v3545_v35  ;;  %v4317_v12 = vld [vmem:[#allocation7 + $0x4c] sm:$0xf0] }
  0xeb   :  { %1611 = vmatpush.bf16.msra.mxu3 %v3592_v51  ;;  %1599 = vmatpush.bf16.msra.mxu2 %v3432_v58  ;;  %v3512_v51 = vor.u32 %v4286_v45, %v3511_v6  ;;  %v3495_v58 = vld [vmem:[#allocation5 + $0x328] sm:$0xf]  ;;  %v4288_v40 = vld [vmem:[#allocation5 + $0x36c] sm:$0xf]  ;;  %v3369_v6 = vld [vmem:[#allocation5 + $0x238] sm:$0xf0] }
  0xec   :  { %1639 = vmatpush.bf16.msrb.mxu1 %v3340_v53  ;;  %1627 = vmatpush.bf16.msrb.mxu0 %v3180_v60  ;;  %v3260_v53 = vor.u32 %v4220_v46, %v3257_v56  ;;  %v3100_v60 = vor.u32 %v4180_v49, %v3097_v11  ;;  %v3496_v3 = vor.u32 %v4282_v61, %v3495_v58  ;;  %v4284_v45 = vld [vmem:[#allocation5 + $0x34c] sm:$0xf]  ;;  %v3513_v46 = vld [vmem:[#allocation5 + $0x358] sm:$0xf0]  ;;  %v4333_v61 = vld [vmem:[#allocation7 + $0xcc] sm:$0xf0] }
  0xed   :  { %1591 = vmatmul.bf16.vlgmr.msra.gmra.mxu1 %v4667_v14  ;;  %v3353_v49 = vld [vmem:[#allocation5 + $0x218] sm:$0xf0]  ;;  %v3516_v11 = vor.u32 %v4284_v45, %v3513_v46  ;;  %v4280_v50 = vld [vmem:[#allocation5 + $0x32c] sm:$0xf]  ;;  %v3792_v25 = vld [vmem:[#allocation7 + $0x180] sm:$0xf] }
  0xee   :  { %v3497_v47 = vld [vmem:[#allocation5 + $0x338] sm:$0xf0]  ;;  %v4276_v54 = vld [vmem:[#allocation5 + $0x30c] sm:$0xf]  ;;  %v4401_v35 = vld [vmem:[#allocation7 + $0x2ec] sm:$0xf0] }
  0xef   :  { %1612 = vmatpush.bf16.msra.mxu3 %v3576_v63  ;;  %1600 = vmatpush.bf16.msra.mxu2 %v3416_v7  ;;  %v3244_v63 = vor.u32 %v4216_v62, %v3241_v0  ;;  %v3479_v7 = vld [vmem:[#allocation5 + $0x308] sm:$0xf]  ;;  %v3481_v36 = vld [vmem:[#allocation5 + $0x318] sm:$0xf0]  ;;  %v3680_v0 = vld [vmem:[#allocation7 + $0xa0] sm:$0xf] }
  0xf0   :  { %1640 = vmatpush.bf16.msrb.mxu1 %v3324_v4  ;;  %1628 = vmatpush.bf16.msrb.mxu0 %v3164_v52  ;;  %v4268_v4 = vld [vmem:[#allocation5 + $0x2cc] sm:$0xf]  ;;  %v4278_v52 = vld [vmem:[#allocation5 + $0x314] sm:$0xf0]  ;;  %v3484_v58 = vor.u32 %v4276_v54, %v3481_v36  ;;  %v3682_v45 = vld [vmem:[#allocation7 + $0xb0] sm:$0xf0] }
  0xf1   :  { %v3452_v13 = vor.u32 %v4268_v4, %v3449_v5  ;;  %v3480_v15 = vor.u32 %v4278_v52, %v3479_v7  ;;  %v3648_v5 = vld [vmem:[#allocation7 + $0x60] sm:$0xf]  ;;  %v4321_v7 = vld [vmem:[#allocation7 + $0x6c] sm:$0xf0] }
  0xf2   :  { %1549 = vmatmul.bf16.vlgmr.msrb.gmra.mxu2 %v4683_v27  ;;  %v3840_v52 = vld [vmem:[#allocation7 + $0x1e0] sm:$0xf]  ;;  %v3649_v8 = vor.u32 %v4321_v7, %v3648_v5  ;;  %v3842_v5 = vld [vmem:[#allocation7 + $0x1f0] sm:$0xf0] }
  0xf3   :  { %1613 = vmatpush.bf16.msra.mxu3 %v3560_v17  ;;  %1601 = vmatpush.bf16.msra.mxu2 %v3400_v24  ;;  %v4264_v17 = vld [vmem:[#allocation5 + $0x2ac] sm:$0xf]  ;;  %v3417_v24 = vld [vmem:[#allocation5 + $0x298] sm:$0xf0] }
  0xf4   :  { %1641 = vmatpush.bf16.msrb.mxu1 %v3308_v18  ;;  %1629 = vmatpush.bf16.msrb.mxu0 %v3148_v20  ;;  %v3433_v18 = vld [vmem:[#allocation5 + $0x2b8] sm:$0xf0]  ;;  %v4300_v20 = vld [vmem:[#allocation5 + $0x3cc] sm:$0xf] }
  0xf5   :  { %v3436_v22 = vor.u32 %v4264_v17, %v3433_v18  ;;  %v3580_v28 = vor.u32 %v4300_v20, %v3577_v21  ;;  %v3616_v17 = vld [vmem:[#allocation7 + $0x20] sm:$0xf]  ;;  %v4313_v18 = vld [vmem:[#allocation7 + $0x2c] sm:$0xf0] }
  0xf6   :  { %v3617_v20 = vor.u32 %v4313_v18, %v3616_v17  ;;  %v4361_v21 = vld [vmem:[#allocation7 + $0x1ac] sm:$0xf0] }
  0xf7   :  { %1614 = vmatpush.bf16.msra.mxu3 %v3544_v30  ;;  %1602 = vmatpush.bf16.msra.mxu2 %v3384_v37  ;;  %v4296_v30 = vld [vmem:[#allocation5 + $0x3ac] sm:$0xf]  ;;  %v4381_v17 = vld [vmem:[#allocation7 + $0x24c] sm:$0xf0] }
  0xf8   :  { %1642 = vmatpush.bf16.msrb.mxu1 %v3292_v31  ;;  %1630 = vmatpush.bf16.msrb.mxu0 %v3132_v32  ;;  %v3561_v31 = vld [vmem:[#allocation5 + $0x3b8] sm:$0xf0] }
  0xf9   :  { %v3401_v32 = vld [vmem:[#allocation5 + $0x278] sm:$0xf0]  ;;  %v3564_v33 = vor.u32 %v4296_v30, %v3561_v31  ;;  %v3714_v30 = vld [vmem:[#allocation7 + $0xf0] sm:$0xf0] }
  0xfa   :  { %1563 = vmatmul.bf16.vlgmr.msrb.gmra.mxu3 %v4690_v57  ;;  %v3404_v37 = vor.u32 %v4256_v59, %v3401_v32  ;;  %v3776_v59 = vld [vmem:[#allocation7 + $0x160] sm:$0xf]  ;;  %v4353_v32 = vld [vmem:[#allocation7 + $0x16c] sm:$0xf0] }
  0xfb   :  { %1615 = vmatpush.bf16.msra.mxu3 %v3528_v41  ;;  %1603 = vmatpush.bf16.msra.mxu2 %v3368_v48  ;;  %v3529_v41 = vld [vmem:[#allocation5 + $0x378] sm:$0xf0]  ;;  %v4244_v48 = vld [vmem:[#allocation5 + $0x20c] sm:$0xf]  ;;  %v3777_v34 = vor.u32 %v4353_v32, %v3776_v59  ;;  %v3794_v59 = vld [vmem:[#allocation7 + $0x190] sm:$0xf0] }
  0xfc   :  { %1643 = vmatpush.bf16.msrb.mxu1 %v3276_v42  ;;  %1631 = vmatpush.bf16.msrb.mxu0 %v3116_v44  ;;  %v4248_v42 = vld [vmem:[#allocation5 + $0x22c] sm:$0xf]  ;;  %v3532_v44 = vor.u32 %v4288_v40, %v3529_v41  ;;  %v3760_v40 = vld [vmem:[#allocation7 + $0x140] sm:$0xf]  ;;  %v4349_v41 = vld [vmem:[#allocation7 + $0x14c] sm:$0xf0] }
  0xfd   :  { %v3372_v56 = vor.u32 %v4248_v42, %v3369_v6  ;;  %v3761_v42 = vor.u32 %v4349_v41, %v3760_v40  ;;  %v4397_v6 = vld [vmem:[#allocation7 + $0x2cc] sm:$0xf0]  ;;  %v4351_v40 = vld [vmem:[#allocation7 + $0x164] sm:$0xf]  ;;  %v3778_v41 = vld [vmem:[#allocation7 + $0x170] sm:$0xf0] }
  0xff   :  { %1616 = vmatpush.bf16.msra.mxu3 %v3512_v51  ;;  %1604 = vmatpush.bf16.msra.mxu2 %v3352_v1  ;;  %v3356_v51 = vor.u32 %v4244_v48, %v3353_v49  ;;  %v4329_v1 = vld [vmem:[#allocation7 + $0xac] sm:$0xf0]  ;;  %v3744_v48 = vld [vmem:[#allocation7 + $0x120] sm:$0xf] }
 0x100   :  { %1644 = vmatpush.bf16.msrb.mxu1 %v3260_v53  ;;  %1632 = vmatpush.bf16.msrb.mxu0 %v3100_v60  ;;  %v3500_v53 = vor.u32 %v4280_v50, %v3497_v47  ;;  %v3696_v60 = vld [vmem:[#allocation7 + $0xc0] sm:$0xf]  ;;  %v4345_v49 = vld [vmem:[#allocation7 + $0x12c] sm:$0xf0] }
 0x101   :  { %v3697_v62 = vor.u32 %v4333_v61, %v3696_v60  ;;  %v3745_v50 = vor.u32 %v4345_v49, %v3744_v48  ;;  %v4393_v47 = vld [vmem:[#allocation7 + $0x2ac] sm:$0xf0]  ;;  %v3920_v61 = vld [vmem:[#allocation7 + $0x280] sm:$0xf] }
 0x102   :  { %1605 = vmatmul.bf16.vlgmr.msra.gmra.mxu2 %v4683_v27  ;;  %v4341_v60 = vld [vmem:[#allocation7 + $0x10c] sm:$0xf0] }
 0x103   :  { %1653 = vmatpush.bf16.msrb.mxu2 %v3468_v2  ;;  %1617 = vmatpush.bf16.msra.mxu3 %v3496_v3  ;;  %v3681_v2 = vor.u32 %v4329_v1, %v3680_v0  ;;  %v3664_v3 = vld [vmem:[#allocation7 + $0x80] sm:$0xf]  ;;  %v4389_v0 = vld [vmem:[#allocation7 + $0x28c] sm:$0xf0]  ;;  %v4319_v1 = vld [vmem:[#allocation7 + $0x64] sm:$0xf] }
 0x104   :  { %1645 = vmatpush.bf16.msrb.mxu1 %v3244_v63  ;;  %1633 = vmatmul.bf16.vlgmr.msrb.gmra.mxu0 %v4663_v55  ;;  %v3420_v55 = vor.u32 %v4260_v23, %v3417_v24  ;;  %v4325_v63 = vld [vmem:[#allocation7 + $0x8c] sm:$0xf0]  ;;  %v3600_v23 = vld [vmem:[#allocation7] sm:$0xf] }
 0x105   :  { %2488 = vmatpush.bf16.msra.mxu0 %v3713_v29  ;;  %v3665_v4 = vor.u32 %v4325_v63, %v3664_v3  ;;  %v4309_v24 = vld [vmem:[#allocation7 + $0xc] sm:$0xf0]  ;;  %v4335_v29 = vld [vmem:[#allocation7 + $0xe4] sm:$0xf]  ;;  %v3921_v3 = vor.u32 %v4389_v0, %v3920_v61 }
 0x106   :  { %v3601_v26 = vor.u32 %v4309_v24, %v3600_v23  ;;  %v3810_v23 = vld [vmem:[#allocation7 + $0x1b0] sm:$0xf0]  ;;  %v4429_v48 = vld [vmem:[#allocation7 + $0x3cc] sm:$0xf0] }
 0x107   :  { %1654 = vmatpush.bf16.msrb.mxu2 %v3452_v13  ;;  %1618 = vmatpush.bf16.msra.mxu3 %v3480_v15  ;;  %v3824_v13 = vld [vmem:[#allocation7 + $0x1c0] sm:$0xf]  ;;  %v4365_v15 = vld [vmem:[#allocation7 + $0x1cc] sm:$0xf0] }
 0x108   :  { %1646 = vmatpush.bf16.msrb.mxu1 %v3228_v16  ;;  %v3825_v16 = vor.u32 %v4365_v15, %v3824_v13 }
 0x109   :  { %2489 = vmatpush.bf16.msra.mxu0 %v3697_v62 }
 0x10a   :  { %1619 = vmatmul.bf16.vlgmr.msra.gmra.mxu3 %v4690_v57 }
 0x10b   :  { %1667 = vmatpush.bf16.msrb.mxu3 %v3596_v19  ;;  %1647 = vmatmul.bf16.vlgmr.msrb.gmra.mxu1 %v4667_v14  ;;  %v3388_v14 = vor.u32 %v4252_v43, %v3385_v38  ;;  %v3808_v19 = vld [vmem:[#allocation7 + $0x1a0] sm:$0xf]  ;;  %v3698_v43 = vld [vmem:[#allocation7 + $0xd0] sm:$0xf0] }
 0x10c   :  { %1655 = vmatpush.bf16.msrb.mxu2 %v3436_v22  ;;  %v3809_v22 = vor.u32 %v4361_v21, %v3808_v19  ;;  %v4311_v19 = vld [vmem:[#allocation7 + $0x24] sm:$0xf] }
 0x10d   :  { %2490 = vmatpush.bf16.msra.mxu0 %v3681_v2  ;;  %v3650_v2 = vld [vmem:[#allocation7 + $0x70] sm:$0xf0]  ;;  %v4359_v21 = vld [vmem:[#allocation7 + $0x1a4] sm:$0xf] }
 0x10e   :  { %v3653_v63 = vor.u32 %v4319_v1, %v3650_v2  ;;  %v3813_v24 = vor.u32 %v4359_v21, %v3810_v23  ;;  %v4343_v1 = vld [vmem:[#allocation7 + $0x124] sm:$0xf]  ;;  %v3746_v2 = vld [vmem:[#allocation7 + $0x130] sm:$0xf0] }
 0x10f   :  { %1668 = vmatpush.bf16.msrb.mxu3 %v3580_v28  ;;  %v4357_v28 = vld [vmem:[#allocation7 + $0x18c] sm:$0xf0]  ;;  %v4383_v23 = vld [vmem:[#allocation7 + $0x264] sm:$0xf] }
 0x110   :  { %1656 = vmatpush.bf16.msrb.mxu2 %v3420_v55  ;;  %v3793_v31 = vor.u32 %v4357_v28, %v3792_v25  ;;  %v3717_v55 = vor.u32 %v4335_v29, %v3714_v30  ;;  %v3872_v25 = vld [vmem:[#allocation7 + $0x220] sm:$0xf]  ;;  %v4307_v29 = vld [vmem:[#allocation7 + $0x4] sm:$0xf]  ;;  %v3602_v30 = vld [vmem:[#allocation7 + $0x10] sm:$0xf0] }
 0x111   :  { %2491 = vmatpush.bf16.msra.mxu0 %v3665_v4  ;;  %v4367_v4 = vld [vmem:[#allocation7 + $0x1e4] sm:$0xf] }
 0x112   :  { %v3845_v7 = vor.u32 %v4367_v4, %v3842_v5  ;;  %v3938_v4 = vld [vmem:[#allocation7 + $0x2b0] sm:$0xf0] }
 0x113   :  { %1669 = vmatpush.bf16.msrb.mxu3 %v3564_v33  ;;  %v3968_v33 = vld [vmem:[#allocation7 + $0x2e0] sm:$0xf] }
 0x114   :  { %1657 = vmatpush.bf16.msrb.mxu2 %v3404_v37  ;;  %v4331_v37 = vld [vmem:[#allocation7 + $0xc4] sm:$0xf]  ;;  %v3969_v38 = vor.u32 %v4401_v35, %v3968_v33  ;;  %v4373_v35 = vld [vmem:[#allocation7 + $0x20c] sm:$0xf0] }
 0x115   :  { %2492 = vmatpush.bf16.msra.mxu0 %v3649_v8  ;;  %v4385_v8 = vld [vmem:[#allocation7 + $0x26c] sm:$0xf0] }
 0x117   :  { %1670 = vmatpush.bf16.msrb.mxu3 %v3548_v39  ;;  %v3701_v39 = vor.u32 %v4331_v37, %v3698_v43  ;;  %v4096_v37 = vld [vmem:[#allocation7 + $0x3e0] sm:$0xf] }
 0x118   :  { %1658 = vmatpush.bf16.msrb.mxu2 %v3388_v14  ;;  %v3952_v14 = vld [vmem:[#allocation7 + $0x2c0] sm:$0xf] }
 0x119   :  { %v3953_v46 = vor.u32 %v4397_v6, %v3952_v14  ;;  %v4399_v6 = vld [vmem:[#allocation7 + $0x2e4] sm:$0xf] }
 0x11b   :  { %1671 = vmatpush.bf16.msrb.mxu3 %v3532_v44  ;;  %v4327_v44 = vld [vmem:[#allocation7 + $0xa4] sm:$0xf] }
 0x11c   :  { %1659 = vmatpush.bf16.msrb.mxu2 %v3372_v56  ;;  %v3685_v56 = vor.u32 %v4327_v44, %v3682_v45  ;;  %v3970_v44 = vld [vmem:[#allocation7 + $0x2f0] sm:$0xf0]  ;;  %v4705_v45 = vld [vmem:[%s4767_s6 + $0x3] ss:$8 sm:$0xf] }
 0x11f   :  { %1672 = vmatpush.bf16.msrb.mxu3 %v3516_v11  ;;  %v3936_v11 = vld [vmem:[#allocation7 + $0x2a0] sm:$0xf] }
 0x120   :  { %1660 = vmatpush.bf16.msrb.mxu2 %v3356_v51  ;;  %v4323_v51 = vld [vmem:[#allocation7 + $0x84] sm:$0xf]  ;;  %v3937_v54 = vor.u32 %v4393_v47, %v3936_v11 }
 0x121   :  { %v4347_v11 = vld [vmem:[#allocation7 + $0x144] sm:$0xf] }
 0x122   :  { %v4395_v47 = vld [vmem:[#allocation7 + $0x2c4] sm:$0xf] }
 0x123   :  { %1673 = vmatpush.bf16.msrb.mxu3 %v3500_v53  ;;  %1661 = vmatmul.bf16.vlgmr.msrb.gmra.mxu2 %v4683_v27  ;;  %v4369_v27 = vld [vmem:[#allocation7 + $0x1ec] sm:$0xf0]  ;;  %v3666_v53 = vld [vmem:[#allocation7 + $0x90] sm:$0xf0] }
 0x124   :  { %v3841_v9 = vor.u32 %v4369_v27, %v3840_v52  ;;  %2516 = vmatpush.bf16.msra.mxu2 %v3969_v38  ;;  %v3669_v36 = vor.u32 %v4323_v51, %v3666_v53  ;;  %v3904_v52 = vld [vmem:[#allocation7 + $0x260] sm:$0xf]  ;;  %v3954_v53 = vld [vmem:[#allocation7 + $0x2d0] sm:$0xf0] }
 0x125   :  { %v3905_v27 = vor.u32 %v4385_v8, %v3904_v52  ;;  %v4048_v52 = vld [vmem:[#allocation7 + $0x380] sm:$0xf]  ;;  %v4421_v8 = vld [vmem:[#allocation7 + $0x38c] sm:$0xf0] }
 0x126   :  { %2502 = vmatpush.bf16.msra.mxu1 %v3841_v9  ;;  %v4315_v9 = vld [vmem:[#allocation7 + $0x44] sm:$0xf] }
 0x127   :  { %1674 = vmatpush.bf16.msrb.mxu3 %v3484_v58  ;;  %v3728_v58 = vld [vmem:[#allocation7 + $0x100] sm:$0xf] }
 0x128   :  { %2517 = vmatpush.bf16.msra.mxu2 %v3953_v46  ;;  %v3729_v62 = vor.u32 %v4341_v60, %v3728_v58  ;;  %v3973_v46 = vor.u32 %v4399_v6, %v3970_v44  ;;  %v4064_v58 = vld [vmem:[#allocation7 + $0x3a0] sm:$0xf]  ;;  %v4425_v60 = vld [vmem:[#allocation7 + $0x3ac] sm:$0xf0]  ;;  %v4375_v6 = vld [vmem:[#allocation7 + $0x224] sm:$0xf] }
 0x129   :  { %v4065_v0 = vor.u32 %v4425_v60, %v4064_v58  ;;  %v3874_v44 = vld [vmem:[#allocation7 + $0x230] sm:$0xf0]  ;;  %v4405_v60 = vld [vmem:[#allocation7 + $0x30c] sm:$0xf0] }
 0x12a   :  { %1675 = vmatmul.bf16.vlgmr.msrb.gmra.mxu3 %v4690_v57  ;;  %v3633_v57 = vor.u32 %v4317_v12, %v3632_v10  ;;  %2503 = vmatpush.bf16.msra.mxu1 %v3825_v16  ;;  %v3634_v10 = vld [vmem:[#allocation7 + $0x50] sm:$0xf0]  ;;  %v4363_v12 = vld [vmem:[#allocation7 + $0x1c4] sm:$0xf]  ;;  %v3888_v16 = vld [vmem:[#allocation7 + $0x240] sm:$0xf] }
 0x12b   :  { %v3637_v13 = vor.u32 %v4315_v9, %v3634_v10  ;;  %v3889_v18 = vor.u32 %v4381_v17, %v3888_v16  ;;  %v4049_v9 = vor.u32 %v4421_v8, %v4048_v52  ;;  %v4339_v10 = vld [vmem:[#allocation7 + $0x104] sm:$0xf] }
 0x12c   :  { %2493 = vmatpush.bf16.msra.mxu0 %v3633_v57  ;;  %2518 = vmatpush.bf16.msra.mxu2 %v3937_v54  ;;  %v3826_v57 = vld [vmem:[#allocation7 + $0x1d0] sm:$0xf0]  ;;  %v3957_v54 = vor.u32 %v4395_v47, %v3954_v53  ;;  %v3704_v47 = vld [vmem:[#allocation7 + $0xc8] sm:$0xf] }
 0x12d   :  { %v3829_v15 = vor.u32 %v4363_v12, %v3826_v57  ;;  %v3730_v12 = vld [vmem:[#allocation7 + $0x110] sm:$0xf0] }
 0x12e   :  { %2504 = vmatpush.bf16.msra.mxu1 %v3809_v22  ;;  %v3733_v57 = vor.u32 %v4339_v10, %v3730_v12  ;;  %v3688_v10 = vld [vmem:[#allocation7 + $0xa8] sm:$0xf] }
 0x130   :  { %2494 = vmatpush.bf16.msra.mxu0 %v3617_v20  ;;  %2519 = vmatpush.bf16.msra.mxu2 %v3921_v3  ;;  %v3618_v20 = vld [vmem:[#allocation7 + $0x30] sm:$0xf0]  ;;  %v4391_v3 = vld [vmem:[#allocation7 + $0x2a4] sm:$0xf] }
 0x131   :  { %v3621_v22 = vor.u32 %v4311_v19, %v3618_v20  ;;  %v4417_v19 = vld [vmem:[#allocation7 + $0x36c] sm:$0xf0] }
 0x132   :  { %2505 = vmatpush.bf16.msra.mxu1 %v3793_v31  ;;  %v4355_v31 = vld [vmem:[#allocation7 + $0x184] sm:$0xf] }
 0x133   :  { %v3797_v33 = vor.u32 %v4355_v31, %v3794_v59  ;;  %v4413_v31 = vld [vmem:[#allocation7 + $0x34c] sm:$0xf0] }
 0x134   :  { %2495 = vmatpush.bf16.msra.mxu0 %v3601_v26  ;;  %2520 = vmatpush.bf16.msra.mxu2 %v3905_v27  ;;  %v4377_v26 = vld [vmem:[#allocation7 + $0x22c] sm:$0xf0] }
 0x135   :  { %v3873_v28 = vor.u32 %v4377_v26, %v3872_v25 }
 0x136   :  { %2506 = vmatpush.bf16.msra.mxu1 %v3777_v34  ;;  %v3856_v34 = vld [vmem:[#allocation7 + $0x200] sm:$0xf] }
 0x137   :  { %v3857_v38 = vor.u32 %v4373_v35, %v3856_v34  ;;  %v4379_v34 = vld [vmem:[#allocation7 + $0x244] sm:$0xf]  ;;  %v3890_v35 = vld [vmem:[#allocation7 + $0x250] sm:$0xf0] }
 0x138   :  { %2544 = vmatpush.bf16.msrb.mxu0 %v3717_v55  ;;  %2521 = vmatpush.bf16.msra.mxu2 %v3889_v18  ;;  %v3605_v55 = vor.u32 %v4307_v29, %v3602_v30  ;;  %v4032_v18 = vld [vmem:[#allocation7 + $0x360] sm:$0xf] }
 0x139   :  { %v4016_v30 = vld [vmem:[#allocation7 + $0x340] sm:$0xf] }
 0x13a   :  { %2507 = vmatpush.bf16.msra.mxu1 %v3761_v42  ;;  %v3781_v42 = vor.u32 %v4351_v40, %v3778_v41  ;;  %v4409_v40 = vld [vmem:[#allocation7 + $0x32c] sm:$0xf0] }
 0x13c   :  { %2545 = vmatpush.bf16.msrb.mxu0 %v3701_v39  ;;  %2522 = vmatpush.bf16.msra.mxu2 %v3873_v28  ;;  %v4433_v39 = vld [vmem:[#allocation7 + $0x3ec] sm:$0xf0] }
 0x13d   :  { %v4097_v14 = vor.u32 %v4433_v39, %v4096_v37  ;;  %v3893_v37 = vor.u32 %v4379_v34, %v3890_v35  ;;  %v4000_v39 = vld [vmem:[#allocation7 + $0x320] sm:$0xf]  ;;  %v3848_v35 = vld [vmem:[#allocation7 + $0x1e8] sm:$0xf] }
 0x13e   :  { %2508 = vmatpush.bf16.msra.mxu1 %v3745_v50  ;;  %v3762_v50 = vld [vmem:[#allocation7 + $0x150] sm:$0xf0] }
 0x13f   :  { %v1466_v32 = vpop.f32.mrf.mxu0  ;;  %2530 = vmatpush.bf16.msra.mxu3 %v4097_v14  ;;  %v3765_v51 = vor.u32 %v4347_v11, %v3762_v50  ;;  %v810_v11 = vperm.slane %v4705_v45, 1 }
 0x140   :  { %2546 = vmatpush.bf16.msrb.mxu0 %v3685_v56  ;;  %2523 = vmatpush.bf16.msra.mxu2 %v3857_v38  ;;  %v4080_v56 = vld [vmem:[#allocation7 + $0x3c0] sm:$0xf] }
 0x141   :  { %v4081_v49 = vor.u32 %v4429_v48, %v4080_v56  ;;  %v3720_v56 = vld [vmem:[#allocation7 + $0xe8] sm:$0xf]  ;;  %v4338_v48 = vld [vmem:[#allocation7 + $0xf4] sm:$0xf0] }
 0x142   :  { %2509 = vmatpush.bf16.msra.mxu1 %v3729_v62  ;;  %v3721_v58 = vor.u32 %v4338_v48, %v3720_v56  ;;  %v3640_v56 = vld [vmem:[#allocation7 + $0x48] sm:$0xf]  ;;  %v4318_v48 = vld [vmem:[#allocation7 + $0x54] sm:$0xf0] }
 0x143   :  { %2531 = vmatpush.bf16.msra.mxu3 %v4081_v49  ;;  %v3877_v49 = vor.u32 %v4375_v6, %v3874_v44 }
 0x144   :  { %2547 = vmatpush.bf16.msrb.mxu0 %v3669_v36  ;;  %2572 = vmatpush.bf16.msrb.mxu2 %v3973_v46  ;;  %v809_v36 = vperm.slane %v4705_v45, 0 }
 0x146   :  { %2558 = vmatpush.bf16.msrb.mxu1 %v3845_v7  ;;  %v3941_v7 = vor.u32 %v4391_v3, %v3938_v4  ;;  %v1467_v27 = vadd.f32 %v1466_v32, %v809_v36  ;;  %v4098_v4 = vld [vmem:[#allocation7 + $0x3f0] sm:$0xf0] }
 0x147   :  { %v1480_v43 = vpop.f32.mrf.mxu1  ;;  %v1468_v61 = vpop.f32.mrf.mxu0  ;;  %2532 = vmatpush.bf16.msra.mxu3 %v4065_v0 }
 0x148   :  { %2548 = vmatpush.bf16.msrb.mxu0 %v3653_v63  ;;  %2573 = vmatpush.bf16.msrb.mxu2 %v3957_v54  ;;  %v3749_v63 = vor.u32 %v4343_v1, %v3746_v2  ;;  %v1481_v20 = vadd.f32 %v1480_v43, %v1467_v27  ;;  %v1469_v26 = vadd.f32 %v1468_v61, %v809_v36  ;;  %v4371_v61 = vld [vmem:[#allocation7 + $0x204] sm:$0xf]  ;;  %v4334_v1 = vld [vmem:[#allocation7 + $0xd4] sm:$0xf0] }
 0x14a   :  { %2559 = vmatpush.bf16.msrb.mxu1 %v3829_v15  ;;  %v3922_v15 = vld [vmem:[#allocation7 + $0x290] sm:$0xf0] }
 0x14b   :  { %2533 = vmatpush.bf16.msra.mxu3 %v4049_v9  ;;  %v3705_v9 = vor.u32 %v4334_v1, %v3704_v47  ;;  %v4415_v47 = vld [vmem:[#allocation7 + $0x364] sm:$0xf]  ;;  %v4314_v1 = vld [vmem:[#allocation7 + $0x34] sm:$0xf0] }
 0x14c   :  { %2549 = vmatpush.bf16.msrb.mxu0 %v3637_v13  ;;  %2574 = vmatpush.bf16.msrb.mxu2 %v3941_v7  ;;  %v4387_v13 = vld [vmem:[#allocation7 + $0x284] sm:$0xf] }
 0x14d   :  { %v3925_v16 = vor.u32 %v4387_v13, %v3922_v15  ;;  %v4330_v13 = vld [vmem:[#allocation7 + $0xb4] sm:$0xf0]  ;;  %v4082_v15 = vld [vmem:[#allocation7 + $0x3d0] sm:$0xf0] }
 0x14e   :  { %2560 = vmatpush.bf16.msrb.mxu1 %v3813_v24  ;;  %v3906_v24 = vld [vmem:[#allocation7 + $0x270] sm:$0xf0] }
 0x14f   :  { %v1482_v5 = vpop.f32.mrf.mxu1  ;;  %v3909_v25 = vor.u32 %v4383_v23, %v3906_v24  ;;  %v1522_v28 = vpop.f32.mrf.mxu0  ;;  %v4326_v23 = vld [vmem:[#allocation7 + $0x94] sm:$0xf0]  ;;  %v4423_v24 = vld [vmem:[#allocation7 + $0x3a4] sm:$0xf] }
 0x150   :  { %2550 = vmatpush.bf16.msrb.mxu0 %v3621_v22  ;;  %2575 = vmatpush.bf16.msrb.mxu2 %v3925_v16  ;;  %v4033_v22 = vor.u32 %v4417_v19, %v4032_v18 }
 0x152   :  { %2561 = vmatpush.bf16.msrb.mxu1 %v3797_v33  ;;  %2534 = vmatpush.bf16.msra.mxu3 %v4033_v22  ;;  %v4017_v33 = vor.u32 %v4413_v31, %v4016_v30  ;;  %v3672_v22 = vld [vmem:[#allocation7 + $0x88] sm:$0xf] }
 0x153   :  { %v3656_v31 = vld [vmem:[#allocation7 + $0x68] sm:$0xf]  ;;  %v3673_v34 = vor.u32 %v4326_v23, %v3672_v22  ;;  %v3722_v22 = vld [vmem:[#allocation7 + $0xf8] sm:$0xf0] }
 0x154   :  { %2551 = vmatpush.bf16.msrb.mxu0 %v3605_v55  ;;  %v1483_v55 = vadd.f32 %v1482_v5, %v1469_v26  ;;  %2576 = vmatpush.bf16.msrb.mxu2 %v3909_v25  ;;  %v1523_v5 = vadd.f32 %v1522_v28, %v810_v11  ;;  %v4066_v25 = vld [vmem:[#allocation7 + $0x3b0] sm:$0xf0] }
 0x156   :  { %2562 = vmatpush.bf16.msrb.mxu1 %v3781_v42  ;;  %2535 = vmatpush.bf16.msra.mxu3 %v4017_v33  ;;  %v4001_v42 = vor.u32 %v4409_v40, %v4000_v39 }
 0x157   :  { %v1536_v59 = vpop.f32.mrf.mxu1  ;;  %v1524_v53 = vpop.f32.mrf.mxu0 }
 0x158   :  { %2577 = vmatpush.bf16.msrb.mxu2 %v3893_v37  ;;  %v1537_v27 = vadd.f32 %v1536_v59, %v1523_v5  ;;  %v1525_v16 = vadd.f32 %v1524_v53, %v810_v11  ;;  %v4370_v37 = vld [vmem:[#allocation7 + $0x1f4] sm:$0xf0]  ;;  %v4018_v5 = vld [vmem:[#allocation7 + $0x350] sm:$0xf0] }
 0x15a   :  { %2563 = vmatpush.bf16.msrb.mxu1 %v3765_v51  ;;  %2536 = vmatpush.bf16.msra.mxu3 %v4001_v42  ;;  %v3984_v51 = vld [vmem:[#allocation7 + $0x300] sm:$0xf] }
 0x15b   :  { %v3985_v2 = vor.u32 %v4405_v60, %v3984_v51  ;;  %v4034_v51 = vld [vmem:[#allocation7 + $0x370] sm:$0xf0]  ;;  %v3641_v60 = vor.u32 %v4318_v48, %v3640_v56  ;;  %v3960_v56 = vld [vmem:[#allocation7 + $0x2c8] sm:$0xf] }
 0x15c   :  { %2578 = vmatpush.bf16.msrb.mxu2 %v3877_v49  ;;  %v3832_v49 = vld [vmem:[#allocation7 + $0x1c8] sm:$0xf]  ;;  %v4037_v53 = vor.u32 %v4415_v47, %v4034_v51  ;;  %v3690_v47 = vld [vmem:[#allocation7 + $0xb8] sm:$0xf0] }
 0x15e   :  { %2564 = vmatpush.bf16.msrb.mxu1 %v3749_v63  ;;  %v4431_v63 = vld [vmem:[#allocation7 + $0x3e4] sm:$0xf]  ;;  %2537 = vmatpush.bf16.msra.mxu3 %v3985_v2  ;;  %v3816_v2 = vld [vmem:[#allocation7 + $0x1a8] sm:$0xf] }
 0x15f   :  { %v1538_v7 = vpop.f32.mrf.mxu1  ;;  %v4101_v52 = vor.u32 %v4431_v63, %v4098_v4  ;;  %v1578_v26 = vpop.f32.mrf.mxu0  ;;  %v4362_v63 = vld [vmem:[#allocation7 + $0x1b4] sm:$0xf0]  ;;  %v4411_v4 = vld [vmem:[#allocation7 + $0x344] sm:$0xf] }
 0x160   :  { %v1539_v19 = vadd.f32 %v1538_v7, %v1525_v16 }
 0x162   :  { %2565 = vmatpush.bf16.msrb.mxu1 %v3733_v57  ;;  %2586 = vmatpush.bf16.msrb.mxu3 %v4101_v52  ;;  %v4427_v57 = vld [vmem:[#allocation7 + $0x3c4] sm:$0xf]  ;;  %v4021_v52 = vor.u32 %v4411_v4, %v4018_v5 }
 0x163   :  { %v4085_v18 = vor.u32 %v4427_v57, %v4082_v15  ;;  %v4310_v57 = vld [vmem:[#allocation7 + $0x14] sm:$0xf0]  ;;  %v3800_v15 = vld [vmem:[#allocation7 + $0x188] sm:$0xf] }
 0x165   :  { %v1494_v62 = vpop.f32.mrf.mxu2 }
 0x166   :  { %v1495_v29 = vadd.f32 %v1494_v62, %v1481_v20  ;;  %v3858_v62 = vld [vmem:[#allocation7 + $0x210] sm:$0xf0]  ;;  %2587 = vmatpush.bf16.msrb.mxu3 %v4085_v18  ;;  %v4358_v18 = vld [vmem:[#allocation7 + $0x194] sm:$0xf0] }
 0x167   :  { %v3861_v3 = vor.u32 %v4371_v61, %v3858_v62  ;;  %v3624_v62 = vld [vmem:[#allocation7 + $0x28] sm:$0xf] }
 0x169   :  { %2579 = vmatpush.bf16.msrb.mxu2 %v3861_v3 }
 0x16a   :  { %v1592_v59 = vpop.f32.mrf.mxu1 }
 0x16d   :  { %v1508_v17 = vpop.f32.mrf.mxu3  ;;  %v1496_v21 = vpop.f32.mrf.mxu2 }
 0x16e   :  { %v1509_v32 = vadd.f32 %v1508_v17, %v1495_v29  ;;  %v1497_v43 = vadd.f32 %v1496_v21, %v1483_v55  ;;  %v3689_v21 = vor.u32 %v4330_v13, %v3688_v10  ;;  %v4069_v29 = vor.u32 %v4423_v24, %v4066_v25  ;;  %v4322_v55 = vld [vmem:[#allocation7 + $0x74] sm:$0xf0]  ;;  %v3608_v13 = vld [vmem:[#allocation7 + $0x8] sm:$0xf] }
 0x16f   :  { %v3657_v44 = vor.u32 %v4322_v55, %v3656_v31  ;;  %v3625_v10 = vor.u32 %v4314_v1, %v3624_v62  ;;  %v3784_v25 = vld [vmem:[#allocation7 + $0x168] sm:$0xf]  ;;  %v4402_v55 = vld [vmem:[#allocation7 + $0x2f4] sm:$0xf0]  ;;  %v4324_v1 = vld [vmem:[#allocation7 + $0x8c] sm:$0xf] }
 0x170   :  { %v1689_v41 = vmul.f32 0.01, %v1509_v32  ;;  %vm1681_vm0 = vcmp.gt.f32.partialorder %v1509_v32, 0.0  ;;  %2588 = vmatpush.bf16.msrb.mxu3 %v4069_v29  ;;  %v3801_v29 = vor.u32 %v4358_v18, %v3800_v15  ;;  %v3976_v31 = vld [vmem:[#allocation7 + $0x2e8] sm:$0xf] }
 0x171   :  { %v4394_v62 = vld [vmem:[#allocation7 + $0x2b4] sm:$0xf0]  ;;  %v3850_v15 = vld [vmem:[#allocation7 + $0x1f8] sm:$0xf0] }
 0x172   :  { %v1697_v54 = vsel %vm1681_vm0, %v1509_v32, %v1689_v41  ;;  %v811_v41 = vperm.slane %v4705_v45, 2  ;;  %v1594_v7 = vpop.f32.mrf.mxu1 }
 0x175   :  { %v1510_v38 = vpop.f32.mrf.mxu3  ;;  %v1550_v46 = vpop.f32.mrf.mxu2 }
 0x176   :  { %v1511_v14 = vadd.f32 %v1510_v38, %v1497_v43  ;;  %v1551_v17 = vadd.f32 %v1550_v46, %v1537_v27  ;;  %v4419_v43 = vld [vmem:[#allocation7 + $0x384] sm:$0xf]  ;;  %v4050_v38 = vld [vmem:[#allocation7 + $0x390] sm:$0xf0]  ;;  %v3849_v46 = vor.u32 %v4370_v37, %v3848_v35  ;;  %v4332_v37 = vld [vmem:[#allocation7 + $0xcc] sm:$0xf] }
 0x177   :  { %v3986_v35 = vld [vmem:[#allocation7 + $0x310] sm:$0xf0] }
 0x178   :  { %vm1685_vm1 = vcmp.gt.f32.partialorder %v1511_v14, 0.0  ;;  %v1693_v50 = vmul.f32 0.01, %v1511_v14 }
 0x17a   :  { %v1701_v36 = vsel %vm1685_vm1, %v1511_v14, %v1693_v50  ;;  %v4053_v14 = vor.u32 %v4419_v43, %v4050_v38  ;;  %v4366_v50 = vld [vmem:[#allocation7 + $0x1d4] sm:$0xf0]  ;;  %v3706_v43 = vld [vmem:[#allocation7 + $0xd8] sm:$0xf0] }
 0x17b   :  { %v4709_v0 = vpack.c.bf16 %v1701_v36, %v1697_v54  ;;  %v1579_v54 = vadd.f32 %v1578_v26, %v811_v41  ;;  %v1580_v36 = vpop.f32.mrf.mxu0  ;;  %v3833_v61 = vor.u32 %v4366_v50, %v3832_v49  ;;  %v4398_v49 = vld [vmem:[#allocation7 + $0x2d4] sm:$0xf0]  ;;  %v4328_v50 = vld [vmem:[#allocation7 + $0xac] sm:$0xf] }
 0x17c   :  { %2589 = vmatpush.bf16.msrb.mxu3 %v4053_v14 }
 0x17d   :  { %v1564_v8 = vpop.f32.mrf.mxu3  ;;  %2496 = vmatmul.bf16.vlgmr.msra.gmra.mxu0 %v4709_v0  ;;  %v1552_v12 = vpop.f32.mrf.mxu2  ;;  %v1593_v3 = vadd.f32 %v1592_v59, %v1579_v54  ;;  %v3961_v54 = vor.u32 %v4398_v49, %v3960_v56  ;;  %v4378_v56 = vld [vmem:[#allocation7 + $0x234] sm:$0xf0]  ;;  %v4308_v49 = vld [vmem:[#allocation7 + $0xc] sm:$0xf] }
 0x17e   :  { %2600 = vmatpush.bf16.msra.mxu0 %v3721_v58  ;;  %v1565_v20 = vadd.f32 %v1564_v8, %v1551_v17  ;;  %v1553_v28 = vadd.f32 %v1552_v12, %v1539_v19  ;;  %v1581_v8 = vadd.f32 %v1580_v36, %v811_v41  ;;  %v3817_v12 = vor.u32 %v4362_v63, %v3816_v2  ;;  %v4407_v19 = vld [vmem:[#allocation7 + $0x324] sm:$0xf]  ;;  %v3674_v2 = vld [vmem:[#allocation7 + $0x98] sm:$0xf0] }
 0x17f   :  { %v3977_v41 = vor.u32 %v4402_v55, %v3976_v31  ;;  %v3693_v36 = vor.u32 %v4328_v50, %v3690_v47  ;;  %v3677_v5 = vor.u32 %v4324_v1, %v3674_v2  ;;  %v3610_v50 = vld [vmem:[#allocation7 + $0x18] sm:$0xf0] }
 0x180   :  { %v1690_v32 = vmul.f32 0.01, %v1565_v20  ;;  %vm1682_vm2 = vcmp.gt.f32.partialorder %v1565_v20, 0.0  ;;  %2590 = vmatpush.bf16.msrb.mxu3 %v4037_v53  ;;  %v1595_v16 = vadd.f32 %v1594_v7, %v1581_v8  ;;  %v3736_v7 = vld [vmem:[#allocation7 + $0x108] sm:$0xf]  ;;  %v3613_v2 = vor.u32 %v4308_v49, %v3610_v50 }
 0x181   :  { %v3928_v8 = vld [vmem:[#allocation7 + $0x288] sm:$0xf]  ;;  %v4380_v49 = vld [vmem:[#allocation7 + $0x24c] sm:$0xf]  ;;  %v3898_v50 = vld [vmem:[#allocation7 + $0x258] sm:$0xf0] }
 0x182   :  { %2601 = vmatpush.bf16.msra.mxu0 %v3705_v9  ;;  %v1698_v42 = vsel %vm1682_vm2, %v1565_v20, %v1690_v32  ;;  %v4002_v20 = vld [vmem:[#allocation7 + $0x330] sm:$0xf0]  ;;  %vm2809_vm2 = vcmask 7168  }
 0x183   :  { %v4005_v23 = vor.u32 %v4407_v19, %v4002_v20  ;;  %v1634_v53 = vpop.f32.mrf.mxu0  ;;  %v3912_v19 = vld [vmem:[#allocation7 + $0x268] sm:$0xf] }
 0x184   :  { %2591 = vmatpush.bf16.msrb.mxu3 %v4021_v52  ;;  %v4342_v52 = vld [vmem:[#allocation7 + $0x114] sm:$0xf0] }
 0x185   :  { %v1566_v30 = vpop.f32.mrf.mxu3  ;;  %v1606_v40 = vpop.f32.mrf.mxu2 }
 0x186   :  { %v1567_v33 = vadd.f32 %v1566_v30, %v1553_v28  ;;  %2602 = vmatpush.bf16.msra.mxu0 %v3689_v21  ;;  %v1607_v27 = vadd.f32 %v1606_v40, %v1593_v3  ;;  %v4336_v21 = vld [vmem:[#allocation7 + $0xec] sm:$0xf]  ;;  %v3609_v28 = vor.u32 %v4310_v57, %v3608_v13  ;;  %v4354_v30 = vld [vmem:[#allocation7 + $0x174] sm:$0xf0]  ;;  %v812_v13 = vperm.slane %v4705_v45, 3 }
 0x187   :  { %v3785_v40 = vor.u32 %v4354_v30, %v3784_v25  ;;  %v4368_v57 = vld [vmem:[#allocation7 + $0x1ec] sm:$0xf] }
 0x188   :  { %vm1686_vm3 = vcmp.gt.f32.partialorder %v1567_v33, 0.0  ;;  %v1694_v39 = vmul.f32 0.01, %v1567_v33  ;;  %2592 = vmatpush.bf16.msrb.mxu3 %v4005_v23  ;;  %v1648_v3 = vpop.f32.mrf.mxu1  ;;  %v3853_v20 = vor.u32 %v4368_v57, %v3850_v15  ;;  %v3642_v23 = vld [vmem:[#allocation7 + $0x58] sm:$0xf0] }
 0x18a   :  { %v1702_v6 = vsel %vm1686_vm3, %v1567_v33, %v1694_v39  ;;  %2603 = vmatpush.bf16.msra.mxu0 %v3673_v34  ;;  %v3725_v33 = vor.u32 %v4336_v21, %v3722_v22  ;;  %v4403_v34 = vld [vmem:[#allocation7 + $0x304] sm:$0xf]  ;;  %v4386_v21 = vld [vmem:[#allocation7 + $0x274] sm:$0xf0]  ;;  %v4316_v22 = vld [vmem:[#allocation7 + $0x4c] sm:$0xf] }
 0x18b   :  { %v4713_v11 = vpack.c.bf16 %v1702_v6, %v1698_v42  ;;  %v3989_v38 = vor.u32 %v4403_v34, %v3986_v35  ;;  %v3709_v6 = vor.u32 %v4332_v37, %v3706_v43  ;;  %v1636_v25 = vpop.f32.mrf.mxu0  ;;  %v3913_v31 = vor.u32 %v4386_v21, %v3912_v19  ;;  %v4382_v34 = vld [vmem:[#allocation7 + $0x254] sm:$0xf0]  ;;  %v4312_v35 = vld [vmem:[#allocation7 + $0x2c] sm:$0xf]  ;;  %v3626_v37 = vld [vmem:[#allocation7 + $0x38] sm:$0xf0] }
 0x18c   :  { %v3645_v55 = vor.u32 %v4316_v22, %v3642_v23  ;;  %v3770_v19 = vld [vmem:[#allocation7 + $0x158] sm:$0xf0] }
 0x18d   :  { %2510 = vmatmul.bf16.vlgmr.msra.gmra.mxu1 %v4713_v11  ;;  %2552 = vmatmul.bf16.vlgmr.msrb.gmra.mxu0 %v4709_v0  ;;  %v1620_v58 = vpop.f32.mrf.mxu3  ;;  %v1608_v9 = vpop.f32.mrf.mxu2  ;;  %v3962_v21 = vld [vmem:[#allocation7 + $0x2d8] sm:$0xf0] }
 0x18e   :  { %2604 = vmatpush.bf16.msra.mxu0 %v3657_v44  ;;  %2614 = vmatpush.bf16.msra.mxu1 %v3849_v46  ;;  %v1621_v17 = vadd.f32 %v1620_v58, %v1607_v27  ;;  %v1609_v24 = vadd.f32 %v1608_v9, %v1595_v16  ;;  %v3768_v44 = vld [vmem:[#allocation7 + $0x148] sm:$0xf]  ;;  %v4350_v46 = vld [vmem:[#allocation7 + $0x154] sm:$0xf0]  ;;  %v3737_v16 = vor.u32 %v4342_v52, %v3736_v7  ;;  %v4400_v7 = vld [vmem:[#allocation7 + $0x2ec] sm:$0xf] }
 0x18f   :  { %2593 = vmatpush.bf16.msrb.mxu3 %v3989_v38  ;;  %v3769_v51 = vor.u32 %v4350_v46, %v3768_v44  ;;  %v3752_v58 = vld [vmem:[#allocation7 + $0x128] sm:$0xf]  ;;  %v4390_v9 = vld [vmem:[#allocation7 + $0x294] sm:$0xf0]  ;;  %v4360_v38 = vld [vmem:[#allocation7 + $0x1ac] sm:$0xf] }
 0x190   :  { %v1691_v59 = vmul.f32 0.01, %v1621_v17  ;;  %vm1683_vm4 = vcmp.gt.f32.partialorder %v1621_v17, 0.0  ;;  %v1650_v30 = vpop.f32.mrf.mxu1  ;;  %v3880_v44 = vld [vmem:[#allocation7 + $0x228] sm:$0xf] }
 0x191   :  { %v3881_v1 = vor.u32 %v4378_v56, %v3880_v44  ;;  %v4414_v56 = vld [vmem:[#allocation7 + $0x354] sm:$0xf0] }
 0x192   :  { %2605 = vmatpush.bf16.msra.mxu0 %v3641_v60  ;;  %2615 = vmatpush.bf16.msra.mxu1 %v3833_v61  ;;  %v1699_v14 = vsel %vm1683_vm4, %v1621_v17, %v1691_v59  ;;  %v4346_v60 = vld [vmem:[#allocation7 + $0x134] sm:$0xf0]  ;;  %v3944_v61 = vld [vmem:[#allocation7 + $0x2a8] sm:$0xf]  ;;  %v3929_v17 = vor.u32 %v4390_v9, %v3928_v8  ;;  %v3978_v8 = vld [vmem:[#allocation7 + $0x2f8] sm:$0xf0] }
 0x193   :  { %v3753_v63 = vor.u32 %v4346_v60, %v3752_v58  ;;  %v3945_v4 = vor.u32 %v4394_v62, %v3944_v61  ;;  %v3896_v59 = vld [vmem:[#allocation7 + $0x248] sm:$0xf]  ;;  %v4374_v58 = vld [vmem:[#allocation7 + $0x214] sm:$0xf0]  ;;  %v3981_v15 = vor.u32 %v4400_v7, %v3978_v8  ;;  %v4090_v8 = vld [vmem:[#allocation7 + $0x3d8] sm:$0xf0] }
 0x194   :  { %v4104_v60 = vld [vmem:[#allocation7 + $0x3e8] sm:$0xf] }
 0x195   :  { %v1622_v26 = vpop.f32.mrf.mxu3 }
 0x196   :  { %2606 = vmatpush.bf16.msra.mxu0 %v3625_v10  ;;  %2616 = vmatpush.bf16.msra.mxu1 %v3817_v12  ;;  %v1623_v32 = vadd.f32 %v1622_v26, %v1609_v24  ;;  %v4320_v10 = vld [vmem:[#allocation7 + $0x6c] sm:$0xf]  ;;  %v3658_v12 = vld [vmem:[#allocation7 + $0x78] sm:$0xf0]  ;;  %v1635_v24 = vadd.f32 %v1634_v53, %v812_v13 }
 0x197   :  { %v3661_v18 = vor.u32 %v4320_v10, %v3658_v12  ;;  %v4364_v26 = vld [vmem:[#allocation7 + $0x1cc] sm:$0xf]  ;;  %v3802_v53 = vld [vmem:[#allocation7 + $0x198] sm:$0xf0] }
 0x198   :  { %vm1687_vm5 = vcmp.gt.f32.partialorder %v1623_v32, 0.0  ;;  %v1695_v39 = vmul.f32 0.01, %v1623_v32  ;;  %v1649_v45 = vadd.f32 %v1648_v3, %v1635_v24  ;;  %v4434_v3 = vld [vmem:[#allocation7 + $0x3f4] sm:$0xf0] }
 0x199   :  { %v4105_v12 = vor.u32 %v4434_v3, %v4104_v60  ;;  %v3866_v3 = vld [vmem:[#allocation7 + $0x218] sm:$0xf0] }
 0x19a   :  { %2607 = vmatpush.bf16.msra.mxu0 %v3609_v28  ;;  %2617 = vmatpush.bf16.msra.mxu1 %v3801_v29  ;;  %v1703_v42 = vsel %vm1687_vm5, %v1623_v32, %v1695_v39  ;;  %v3834_v28 = vld [vmem:[#allocation7 + $0x1d8] sm:$0xf0]  ;;  %v1637_v32 = vadd.f32 %v1636_v25, %v812_v13  ;;  %v4072_v25 = vld [vmem:[#allocation7 + $0x3a8] sm:$0xf] }
 0x19b   :  { %v4717_v48 = vpack.c.bf16 %v1703_v42, %v1699_v14  ;;  %v3818_v39 = vld [vmem:[#allocation7 + $0x1b8] sm:$0xf0]  ;;  %v3897_v42 = vor.u32 %v4382_v34, %v3896_v59  ;;  %v4056_v59 = vld [vmem:[#allocation7 + $0x388] sm:$0xf] }
 0x19c   :  { %v3821_v46 = vor.u32 %v4360_v38, %v3818_v39  ;;  %v3738_v34 = vld [vmem:[#allocation7 + $0x118] sm:$0xf0] }
 0x19d   :  { %2566 = vmatmul.bf16.vlgmr.msrb.gmra.mxu1 %v4713_v11  ;;  %2608 = vmatmul.bf16.vlgmr.msra.gmra.mxu0 %v4709_v0 }
 0x19e   :  { %2656 = vmatpush.bf16.msrb.mxu0 %v3725_v33  ;;  %2524 = vmatmul.bf16.vlgmr.msra.gmra.mxu2 %v4717_v48  ;;  %v3837_v33 = vor.u32 %v4364_v26, %v3834_v28  ;;  %v4426_v26 = vld [vmem:[#allocation7 + $0x3b4] sm:$0xf0]  ;;  %v4344_v28 = vld [vmem:[#allocation7 + $0x12c] sm:$0xf] }
 0x19f   :  { %2618 = vmatpush.bf16.msra.mxu1 %v3785_v40  ;;  %2628 = vmatpush.bf16.msra.mxu2 %v3977_v41  ;;  %v1651_v40 = vadd.f32 %v1650_v30, %v1637_v32  ;;  %v3946_v30 = vld [vmem:[#allocation7 + $0x2b8] sm:$0xf0]  ;;  %v4422_v32 = vld [vmem:[#allocation7 + $0x394] sm:$0xf0] }
 0x1a2   :  { %2657 = vmatpush.bf16.msrb.mxu0 %v3709_v6  ;;  %v3629_v6 = vor.u32 %v4312_v35, %v3626_v37  ;;  %v4388_v35 = vld [vmem:[#allocation7 + $0x28c] sm:$0xf]  ;;  %v3930_v37 = vld [vmem:[#allocation7 + $0x298] sm:$0xf0] }
 0x1a3   :  { %2619 = vmatpush.bf16.msra.mxu1 %v3769_v51  ;;  %2629 = vmatpush.bf16.msra.mxu2 %v3961_v54  ;;  %v4356_v51 = vld [vmem:[#allocation7 + $0x18c] sm:$0xf]  ;;  %v3933_v39 = vor.u32 %v4388_v35, %v3930_v37 }
 0x1a6   :  { %2658 = vmatpush.bf16.msrb.mxu0 %v3693_v36  ;;  %v1662_v27 = vpop.f32.mrf.mxu2  ;;  %v3864_v36 = vld [vmem:[#allocation7 + $0x208] sm:$0xf] }
 0x1a7   :  { %2620 = vmatpush.bf16.msra.mxu1 %v3753_v63  ;;  %2630 = vmatpush.bf16.msra.mxu2 %v3945_v4  ;;  %v1663_v43 = vadd.f32 %v1662_v27, %v1649_v45  ;;  %v4352_v63 = vld [vmem:[#allocation7 + $0x16c] sm:$0xf]  ;;  %v3805_v4 = vor.u32 %v4356_v51, %v3802_v53  ;;  %v3865_v27 = vor.u32 %v4374_v58, %v3864_v36  ;;  %v4008_v53 = vld [vmem:[#allocation7 + $0x328] sm:$0xf]  ;;  %v3882_v58 = vld [vmem:[#allocation7 + $0x238] sm:$0xf0] }
 0x1a8   :  { %v4392_v45 = vld [vmem:[#allocation7 + $0x2ac] sm:$0xf]  ;;  %v3901_v51 = vor.u32 %v4380_v49, %v3898_v50 }
 0x1a9   :  { %v4376_v36 = vld [vmem:[#allocation7 + $0x22c] sm:$0xf] }
 0x1aa   :  { %2659 = vmatpush.bf16.msrb.mxu0 %v3677_v5  ;;  %v3786_v5 = vld [vmem:[#allocation7 + $0x178] sm:$0xf0] }
 0x1ab   :  { %2621 = vmatpush.bf16.msra.mxu1 %v3737_v16  ;;  %2631 = vmatpush.bf16.msra.mxu2 %v3929_v17  ;;  %v3789_v57 = vor.u32 %v4352_v63, %v3786_v5  ;;  %v4088_v16 = vld [vmem:[#allocation7 + $0x3c8] sm:$0xf]  ;;  %v4430_v17 = vld [vmem:[#allocation7 + $0x3d4] sm:$0xf0]  ;;  %v4432_v63 = vld [vmem:[#allocation7 + $0x3ec] sm:$0xf] }
 0x1ac   :  { %v4089_v22 = vor.u32 %v4430_v17, %v4088_v16  ;;  %v4416_v17 = vld [vmem:[#allocation7 + $0x36c] sm:$0xf] }
 0x1ad   :  { %v1676_v29 = vpop.f32.mrf.mxu3 }
 0x1ae   :  { %2660 = vmatpush.bf16.msrb.mxu0 %v3661_v18  ;;  %2622 = vmatmul.bf16.vlgmr.msra.gmra.mxu1 %v4713_v11  ;;  %v1664_v41 = vpop.f32.mrf.mxu2  ;;  %v1677_v14 = vadd.f32 %v1676_v29, %v1663_v43  ;;  %v4348_v18 = vld [vmem:[#allocation7 + $0x14c] sm:$0xf]  ;;  %v3754_v29 = vld [vmem:[#allocation7 + $0x138] sm:$0xf0]  ;;  %v4057_v43 = vor.u32 %v4422_v32, %v4056_v59 }
 0x1af   :  { %2670 = vmatpush.bf16.msrb.mxu1 %v3853_v20  ;;  %2580 = vmatmul.bf16.vlgmr.msrb.gmra.mxu2 %v4717_v48  ;;  %v1665_v47 = vadd.f32 %v1664_v41, %v1651_v40  ;;  %v4396_v20 = vld [vmem:[#allocation7 + $0x2cc] sm:$0xf]  ;;  %v3773_v23 = vor.u32 %v4348_v18, %v3770_v19  ;;  %v4040_v40 = vld [vmem:[#allocation7 + $0x368] sm:$0xf]  ;;  %v4418_v41 = vld [vmem:[#allocation7 + $0x374] sm:$0xf0] }
 0x1b0   :  { %2632 = vmatpush.bf16.msra.mxu2 %v3913_v31  ;;  %v1692_v61 = vmul.f32 0.01, %v1677_v14  ;;  %vm1684_vm6 = vcmp.gt.f32.partialorder %v1677_v14, 0.0  ;;  %v3965_v24 = vor.u32 %v4396_v20, %v3962_v21  ;;  %v4073_v31 = vor.u32 %v4426_v26, %v4072_v25  ;;  %v4042_v18 = vld [vmem:[#allocation7 + $0x378] sm:$0xf0] }
 0x1b1   :  { %v4045_v19 = vor.u32 %v4416_v17, %v4042_v18  ;;  %v4412_v20 = vld [vmem:[#allocation7 + $0x34c] sm:$0xf]  ;;  %v4026_v21 = vld [vmem:[#allocation7 + $0x358] sm:$0xf0] }
 0x1b2   :  { %2661 = vmatpush.bf16.msrb.mxu0 %v3645_v55  ;;  %v1700_v9 = vsel %vm1684_vm6, %v1677_v14, %v1692_v61  ;;  %v3949_v55 = vor.u32 %v4392_v45, %v3946_v30  ;;  %v4384_v14 = vld [vmem:[#allocation7 + $0x26c] sm:$0xf]  ;;  %v3885_v61 = vor.u32 %v4376_v36, %v3882_v58 }
 0x1b3   :  { %2671 = vmatpush.bf16.msrb.mxu1 %v3837_v33  ;;  %v4340_v33 = vld [vmem:[#allocation7 + $0x10c] sm:$0xf] }
 0x1b4   :  { %2633 = vmatpush.bf16.msra.mxu2 %v3897_v42  ;;  %v3741_v38 = vor.u32 %v4340_v33, %v3738_v34  ;;  %v3914_v42 = vld [vmem:[#allocation7 + $0x278] sm:$0xf0]  ;;  %v4404_v26 = vld [vmem:[#allocation7 + $0x30c] sm:$0xf] }
 0x1b5   :  { %v1678_v54 = vpop.f32.mrf.mxu3  ;;  %v3917_v44 = vor.u32 %v4384_v14, %v3914_v42 }
 0x1b6   :  { %v1679_v62 = vadd.f32 %v1678_v54, %v1665_v47  ;;  %2662 = vmatpush.bf16.msrb.mxu0 %v3629_v6  ;;  %v4041_v6 = vor.u32 %v4418_v41, %v4040_v40  ;;  %v4410_v54 = vld [vmem:[#allocation7 + $0x334] sm:$0xf0] }
 0x1b7   :  { %2672 = vmatpush.bf16.msrb.mxu1 %v3821_v46  ;;  %v4024_v46 = vld [vmem:[#allocation7 + $0x348] sm:$0xf]  ;;  %v4009_v60 = vor.u32 %v4410_v54, %v4008_v53 }
 0x1b8   :  { %vm1688_vm7 = vcmp.gt.f32.partialorder %v1679_v62, 0.0  ;;  %v1696_v52 = vmul.f32 0.01, %v1679_v62  ;;  %2634 = vmatpush.bf16.msra.mxu2 %v3881_v1  ;;  %v4025_v47 = vor.u32 %v4414_v56, %v4024_v46  ;;  %v4406_v1 = vld [vmem:[#allocation7 + $0x314] sm:$0xf0] }
 0x1ba   :  { %v1704_v10 = vsel %vm1688_vm7, %v1679_v62, %v1696_v52  ;;  %2663 = vmatpush.bf16.msrb.mxu0 %v3613_v2  ;;  %v3992_v62 = vld [vmem:[#allocation7 + $0x308] sm:$0xf]  ;;  %v4372_v2 = vld [vmem:[#allocation7 + $0x20c] sm:$0xf] }
 0x1bb   :  { %v4725_v13 = vpack.c.bf16 %v1704_v10, %v1700_v9  ;;  %2673 = vmatpush.bf16.msrb.mxu1 %v3805_v4  ;;  %v4106_v4 = vld [vmem:[#allocation7 + $0x3f8] sm:$0xf0]  ;;  %v3993_v5 = vor.u32 %v4406_v1, %v3992_v62  ;;  %v4428_v52 = vld [vmem:[#allocation7 + $0x3cc] sm:$0xf] }
 0x1bc   :  { %2635 = vmatpush.bf16.msra.mxu2 %v3865_v27  ;;  %v4109_v7 = vor.u32 %v4432_v63, %v4106_v4  ;;  %v4093_v27 = vor.u32 %v4428_v52, %v4090_v8  ;;  %v4424_v9 = vld [vmem:[#allocation7 + $0x3ac] sm:$0xf]  ;;  %v4074_v10 = vld [vmem:[#allocation7 + $0x3b8] sm:$0xf0] }
 0x1bd   :  { %2538 = vmatmul.bf16.vlgmr.msra.gmra.mxu3 %v4725_v13  ;;  %2664 = vmatmul.bf16.vlgmr.msrb.gmra.mxu0 %v4709_v0  ;;  %v3757_v0 = vor.u32 %v4344_v28, %v3754_v29 }
 0x1be   :  { %2642 = vmatpush.bf16.msra.mxu3 %v4105_v12  ;;  %v4077_v12 = vor.u32 %v4424_v9, %v4074_v10  ;;  %v4747_v10 = vld [vmem:[%s4767_s6 + $0x5] ss:$8 sm:$0xf] }
 0x1bf   :  { %2674 = vmatpush.bf16.msrb.mxu1 %v3789_v57  ;;  %2636 = vmatmul.bf16.vlgmr.msra.gmra.mxu2 %v4717_v48  ;;  %v4420_v57 = vld [vmem:[#allocation7 + $0x38c] sm:$0xf] }
 0x1c0   :  { %2684 = vmatpush.bf16.msrb.mxu2 %v3981_v15  ;;  %v4058_v15 = vld [vmem:[#allocation7 + $0x398] sm:$0xf0] }
 0x1c1   :  { %v4061_v16 = vor.u32 %v4420_v57, %v4058_v15 }
 0x1c2   :  { %2643 = vmatpush.bf16.msra.mxu3 %v4089_v22  ;;  %v4029_v22 = vor.u32 %v4412_v20, %v4026_v21 }
 0x1c3   :  { %2675 = vmatpush.bf16.msrb.mxu1 %v3773_v23  ;;  %v4408_v23 = vld [vmem:[#allocation7 + $0x32c] sm:$0xf] }
 0x1c4   :  { %2685 = vmatpush.bf16.msrb.mxu2 %v3965_v24  ;;  %v4010_v24 = vld [vmem:[#allocation7 + $0x338] sm:$0xf0] }
 0x1c5   :  { %v4013_v25 = vor.u32 %v4408_v23, %v4010_v24  ;;  %v2740_v23 = vperm.slane %v4747_v10, 1 }
 0x1c6   :  { %2644 = vmatpush.bf16.msra.mxu3 %v4073_v31 }
 0x1c7   :  { %2676 = vmatpush.bf16.msrb.mxu1 %v3757_v0 }
 0x1c8   :  { %2686 = vmatpush.bf16.msrb.mxu2 %v3949_v55 }
 0x1ca   :  { %2645 = vmatpush.bf16.msra.mxu3 %v4057_v43 }
 0x1cb   :  { %2677 = vmatpush.bf16.msrb.mxu1 %v3741_v38 }
 0x1cc   :  { %2687 = vmatpush.bf16.msrb.mxu2 %v3933_v39 }
 0x1cd   :  { %2594 = vmatmul.bf16.vlgmr.msrb.gmra.mxu3 %v4725_v13 }
 0x1ce   :  { %2646 = vmatpush.bf16.msra.mxu3 %v4041_v6  ;;  %2678 = vmatmul.bf16.vlgmr.msrb.gmra.mxu1 %v4713_v11  ;;  %v3869_v11 = vor.u32 %v4372_v2, %v3866_v3 }
 0x1d0   :  { %2688 = vmatpush.bf16.msrb.mxu2 %v3917_v44 }
 0x1d2   :  { %2647 = vmatpush.bf16.msra.mxu3 %v4025_v47 }
 0x1d4   :  { %2689 = vmatpush.bf16.msrb.mxu2 %v3901_v51 }
 0x1d6   :  { %2648 = vmatpush.bf16.msra.mxu3 %v4009_v60 }
 0x1d8   :  { %2690 = vmatpush.bf16.msrb.mxu2 %v3885_v61 }
 0x1da   :  { %2649 = vmatpush.bf16.msra.mxu3 %v3993_v5 }
 0x1dc   :  { %2691 = vmatpush.bf16.msrb.mxu2 %v3869_v11 }
 0x1dd   :  { %2650 = vmatmul.bf16.vlgmr.msra.gmra.mxu3 %v4725_v13 }
 0x1de   :  { %2698 = vmatpush.bf16.msrb.mxu3 %v4109_v7 }
 0x1df   :  { %2692 = vmatmul.bf16.vlgmr.msrb.gmra.mxu2 %v4717_v48  ;;  %v3994_v48 = vld [vmem:[#allocation7 + $0x318] sm:$0xf0] }
 0x1e0   :  { %v3997_v28 = vor.u32 %v4404_v26, %v3994_v48 }
 0x1e2   :  { %2699 = vmatpush.bf16.msrb.mxu3 %v4093_v27 }
 0x1e6   :  { %2700 = vmatpush.bf16.msrb.mxu3 %v4077_v12 }
 0x1ea   :  { %2701 = vmatpush.bf16.msrb.mxu3 %v4061_v16 }
 0x1ee   :  { %2702 = vmatpush.bf16.msrb.mxu3 %v4045_v19 }
 0x1f2   :  { %2703 = vmatpush.bf16.msrb.mxu3 %v4029_v22  ;;  %v2739_v22 = vperm.slane %v4747_v10, 0 }
 0x1f6   :  { %2704 = vmatpush.bf16.msrb.mxu3 %v4013_v25 }
 0x1fa   :  { %2705 = vmatpush.bf16.msrb.mxu3 %v3997_v28  ;;  %v2497_v29 = vpop.f32.mrf.mxu0 }
 0x1fd   :  { %2706 = vmatmul.bf16.vlgmr.msrb.gmra.mxu3 %v4725_v13  ;;  %v4738_v13 = vld [vmem:[%s4767_s6 + $0x4] ss:$8 sm:$0xf] }
 0x1fe   :  { %v1841_v6 = vperm.slane %v4738_v13, 1  ;;  %v1840_v44 = vperm.slane %v4738_v13, 0  ;;  %v1842_v46 = vperm.slane %v4738_v13, 2  ;;  %v1843_v5 = vperm.slane %v4738_v13, 3 }
 0x200   :  { %v2498_v47 = vadd.f32 %v2497_v29, %v1840_v44 }
 0x202   :  { %v2499_v31 = vpop.f32.mrf.mxu0 }
 0x203   :  { %v2500_v7 = vadd.f32 %v2499_v31, %v1840_v44 }
 0x20a   :  { %v2511_v45 = vpop.f32.mrf.mxu1  ;;  %v2553_v32 = vpop.f32.mrf.mxu0 }
 0x20b   :  { %v2554_v50 = vadd.f32 %v2553_v32, %v1841_v6  ;;  %v2512_v36 = vadd.f32 %v2511_v45, %v2498_v47  ;;  %v2741_v45 = vperm.slane %v4747_v10, 2 }
 0x212   :  { %v2513_v55 = vpop.f32.mrf.mxu1  ;;  %v2555_v37 = vpop.f32.mrf.mxu0 }
 0x213   :  { %v2556_v4 = vadd.f32 %v2555_v37, %v1841_v6  ;;  %v2514_v57 = vadd.f32 %v2513_v55, %v2500_v7 }
 0x21a   :  { %v2567_v34 = vpop.f32.mrf.mxu1  ;;  %v2609_v40 = vpop.f32.mrf.mxu0 }
 0x21b   :  { %v2568_v53 = vadd.f32 %v2567_v34, %v2554_v50  ;;  %v2610_v54 = vadd.f32 %v2609_v40, %v1842_v46 }
 0x221   :  { %v2525_v30 = vpop.f32.mrf.mxu2 }
 0x222   :  { %v2569_v38 = vpop.f32.mrf.mxu1  ;;  %v2611_v56 = vpop.f32.mrf.mxu0  ;;  %v2526_v62 = vadd.f32 %v2525_v30, %v2512_v36 }
 0x223   :  { %v2612_v52 = vadd.f32 %v2611_v56, %v1842_v46  ;;  %v2570_v9 = vadd.f32 %v2569_v38, %v2556_v4 }
 0x229   :  { %v2527_v59 = vpop.f32.mrf.mxu2 }
 0x22a   :  { %v2528_v21 = vadd.f32 %v2527_v59, %v2514_v57 }
 0x22b   :  { %v2623_v14 = vpop.f32.mrf.mxu1 }
 0x22c   :  { %v2624_v60 = vadd.f32 %v2623_v14, %v2610_v54 }
 0x232   :  { %v2581_v35 = vpop.f32.mrf.mxu2 }
 0x233   :  { %v2625_v51 = vpop.f32.mrf.mxu1  ;;  %v2582_v61 = vadd.f32 %v2581_v35, %v2568_v53 }
 0x234   :  { %v2626_v15 = vadd.f32 %v2625_v51, %v2612_v52 }
 0x23a   :  { %v2583_v39 = vpop.f32.mrf.mxu2  ;;  %v2665_v3 = vpop.f32.mrf.mxu0 }
 0x23b   :  { %v2666_v18 = vadd.f32 %v2665_v3, %v1843_v5  ;;  %v2584_v19 = vadd.f32 %v2583_v39, %v2570_v9  ;;  %v2742_v39 = vperm.slane %v4747_v10, 3 }
 0x240   :  { %v2539_v0 = vpop.f32.mrf.mxu3 }
 0x241   :  { %v2540_v63 = vadd.f32 %v2539_v0, %v2526_v62 }
 0x242   :  { %v2637_v42 = vpop.f32.mrf.mxu2  ;;  %v2667_v55 = vpop.f32.mrf.mxu0 }
 0x243   :  { %v2638_v1 = vadd.f32 %v2637_v42, %v2624_v60  ;;  %v2720_v16 = vmul.f32 0.01, %v2540_v63  ;;  %vm2712_vm9 = vcmp.gt.f32.partialorder %v2540_v63, 0.0 }
 0x245   :  { %v2728_v28 = vsel %vm2712_vm9, %v2540_v63, %v2720_v16 }
 0x246   :  { %v2747_v37 = vmul.f32 %v2739_v22, %v2728_v28 }
 0x248   :  { %v2541_v33 = vpop.f32.mrf.mxu3 }
 0x249   :  { %v2542_v29 = vadd.f32 %v2541_v33, %v2528_v21 }
 0x24a   :  { %v2639_v58 = vpop.f32.mrf.mxu2 }
 0x24b   :  { %v2679_v8 = vpop.f32.mrf.mxu1  ;;  %v2640_v25 = vadd.f32 %v2639_v58, %v2626_v15  ;;  %vm2716_vm13 = vcmp.gt.f32.partialorder %v2542_v29, 0.0 }
 0x24c   :  { %v2680_v24 = vadd.f32 %v2679_v8, %v2666_v18 }
 0x250   :  { %v2595_v43 = vpop.f32.mrf.mxu3 }
 0x251   :  { %v2596_v2 = vadd.f32 %v2595_v43, %v2582_v61  ;;  %v2724_v43 = vmul.f32 0.01, %v2542_v29 }
 0x253   :  { %v2721_v12 = vmul.f32 0.01, %v2596_v2  ;;  %vm2713_vm8 = vcmp.gt.f32.partialorder %v2596_v2, 0.0  ;;  %v2681_v38 = vpop.f32.mrf.mxu1  ;;  %v2732_v50 = vsel %vm2716_vm13, %v2542_v29, %v2724_v43 }
 0x254   :  { %v2751_v60 = vmul.f32 %v2739_v22, %v2732_v50 }
 0x255   :  { %v2729_v26 = vsel %vm2713_vm8, %v2596_v2, %v2721_v12 }
 0x256   :  { %v2748_v34 = vmul.f32 %v2740_v23, %v2729_v26 }
 0x258   :  { %v2597_v41 = vpop.f32.mrf.mxu3  ;;  %v2755_v13 = vadd.f32 %v2748_v34, %v2747_v37 }
 0x259   :  { %v2598_v48 = vadd.f32 %v2597_v41, %v2584_v19  ;;  %v2668_v41 = vadd.f32 %v2667_v55, %v1843_v5  ;;  %v4443_v5 = vld [vmem:[#allocation2] ss:$0 sm:$0xff] }
 0x25b   :  { %v2725_v59 = vmul.f32 0.01, %v2598_v48  ;;  %vm2717_vm11 = vcmp.gt.f32.partialorder %v2598_v48, 0.0  ;;  %v2682_v6 = vadd.f32 %v2681_v38, %v2668_v41 }
 0x25d   :  { %v2733_v44 = vsel %vm2717_vm11, %v2598_v48, %v2725_v59 }
 0x25e   :  { %v2752_v53 = vmul.f32 %v2740_v23, %v2733_v44 }
 0x260   :  { %v2651_v49 = vpop.f32.mrf.mxu3 }
 0x261   :  { %v2652_v11 = vadd.f32 %v2651_v49, %v2638_v1  ;;  %v2760_v1 = vadd.f32 %v2752_v53, %v2751_v60 }
 0x262   :  { %v2693_v17 = vpop.f32.mrf.mxu2 }
 0x263   :  { %v2722_v20 = vmul.f32 0.01, %v2652_v11  ;;  %vm2714_vm10 = vcmp.gt.f32.partialorder %v2652_v11, 0.0  ;;  %v2694_v30 = vadd.f32 %v2693_v17, %v2680_v24 }
 0x265   :  { %v2730_v0 = vsel %vm2714_vm10, %v2652_v11, %v2722_v20 }
 0x266   :  { %v2749_v40 = vmul.f32 %v2741_v45, %v2730_v0 }
 0x268   :  { %v2653_v27 = vpop.f32.mrf.mxu3  ;;  %v2756_v49 = vadd.f32 %v2755_v13, %v2749_v40 }
 0x269   :  { %v2654_v31 = vadd.f32 %v2653_v27, %v2640_v25 }
 0x26a   :  { %v2695_v42 = vpop.f32.mrf.mxu2 }
 0x26b   :  { %v2726_v14 = vmul.f32 0.01, %v2654_v31  ;;  %vm2718_vm14 = vcmp.gt.f32.partialorder %v2654_v31, 0.0  ;;  %v2696_v51 = vadd.f32 %v2695_v42, %v2682_v6 }
 0x26d   :  { %v2734_v47 = vsel %vm2718_vm14, %v2654_v31, %v2726_v14 }
 0x26e   :  { %v2753_v61 = vmul.f32 %v2741_v45, %v2734_v47 }
 0x270   :  { %v2761_v63 = vadd.f32 %v2760_v1, %v2753_v61 }
 0x280   :  { %v2707_v32 = vpop.f32.mrf.mxu3 }
 0x281   :  { %v2708_v35 = vadd.f32 %v2707_v32, %v2694_v30 }
 0x283   :  { %vm2715_vm12 = vcmp.gt.f32.partialorder %v2708_v35, 0.0  ;;  %v2723_v33 = vmul.f32 0.01, %v2708_v35 }
 0x285   :  { %v2731_v46 = vsel %vm2715_vm12, %v2708_v35, %v2723_v33 }
 0x286   :  { %v2750_v56 = vmul.f32 %v2742_v39, %v2731_v46 }
 0x288   :  { %v2709_v54 = vpop.f32.mrf.mxu3  ;;  %v2757_v36 = vadd.f32 %v2756_v49, %v2750_v56 }
 0x289   :  { %v2710_v58 = vadd.f32 %v2709_v54, %v2696_v51 }
 0x28a   :  { %2758 = vadd.xlane.f32.xlu2 %v2757_v36 }
 0x28b   :  { %vm2719_vm15 = vcmp.gt.f32.partialorder %v2710_v58, 0.0  ;;  %v2727_v62 = vmul.f32 0.01, %v2710_v58 }
 0x28d   :  { %v2735_v2 = vsel %vm2719_vm15, %v2710_v58, %v2727_v62 }
 0x28e   :  { %v2754_v3 = vmul.f32 %v2742_v39, %v2735_v2 }
 0x290   :  { %v2762_v4 = vadd.f32 %v2761_v63, %v2754_v3 }
 0x292   :  { %2763 = vadd.xlane.f32.xlu2 %v2762_v4 }
 0x2fd   :  { %v2759_v11 = vpop.xlane.xlu2 %2758 }
 0x2fe   :  { %v2769_v7 = vadd.f32 %v4443_v5, %v2759_v11 }
 0x300   :  { %v4111_v52 = vmul.f32 -1.442695, %v2769_v7 }
 0x302   :  { %4444 = vpow2.f32 %v4111_v52 }
 0x305   :  { %v2764_v8 = vpop.xlane.xlu2 %2763 }
 0x306   :  { %v2770_v27 = vadd.f32 %v4443_v5, %v2764_v8 }
 0x308   :  { %v4445_v9 = vpop.eup %4444  ;;  %v4112_v10 = vmul.f32 -1.442695, %v2770_v27 }
 0x309   :  { %v2777_v12 = vadd.f32 1.0, %v4445_v9 }
 0x30a   :  { %4446 = vpow2.f32 %v4112_v10 }
 0x30b   :  { %4448 = vrcp.f32 %v2777_v12  ;;  %v2790_v19 = vand.u32 2147483648, %v2777_v12  ;;  %v2788_v21 = vand.u32 2147483647, %v2777_v12  ;;  %vm2784_vm1 = vweird.f32 %v2777_v12 }
 0x30d   :  { %v2791_v24 = vor.u32 1.1754944e-38, %v2790_v19  ;;  %vm2789_vm4 = vcmp.eq.f32.partialorder %v2788_v21, 8.507059e+37 }
 0x310   :  { %v4447_v57 = vpop.eup %4446 }
 0x311   :  { %v4449_v15 = vpop.eup %4448  ;;  %v2778_v16 = vadd.f32 1.0, %v4447_v57 }
 0x312   :  { %v2780_v17 = vmul.f32 %v4449_v15, %v2777_v12  ;;  %vm2785_vm0 = vweird.f32 %v4449_v15 }
 0x313   :  { %4450 = vrcp.f32 %v2778_v16  ;;  %vm2786_vm3 = vmor %vm2784_vm1, %vm2785_vm0  ;;  %v2805_v29 = vand.u32 2147483648, %v2778_v16  ;;  %v2803_v30 = vand.u32 2147483647, %v2778_v16  ;;  %vm2799_vm6 = vweird.f32 %v2778_v16 }
 0x314   :  { %v2781_v18 = vsub.f32 1.0, %v2780_v17 }
 0x315   :  { %v2806_v0 = vor.u32 1.1754944e-38, %v2805_v29  ;;  %vm2804_vm8 = vcmp.eq.f32.partialorder %v2803_v30, 8.507059e+37 }
 0x316   :  { %v2782_v20 = vmul.f32 %v4449_v15, %v2781_v18 }
 0x318   :  { %v2783_v22 = vadd.f32 %v4449_v15, %v2782_v20 }
 0x319   :  { %v4451_v23 = vpop.eup %4450 }
 0x31a   :  { %v2787_v25 = vsel %vm2786_vm3, %v4449_v15, %v2783_v22  ;;  %v2795_v26 = vmul.f32 %v4451_v23, %v2778_v16  ;;  %vm2800_vm5 = vweird.f32 %v4451_v23 }
 0x31b   :  { %v2792_v48 = vsel %vm2789_vm4, %v2791_v24, %v2787_v25  ;;  %vm2801_vm7 = vmor %vm2799_vm6, %vm2800_vm5 }
 0x31c   :  { %2810 = vst.msk [vmem:[%s4769_s8] sm:$0xff] %vm2809_vm2, %v2792_v48  ;;  %v2796_v28 = vsub.f32 1.0, %v2795_v26 }
 0x31e   :  { %v2797_v45 = vmul.f32 %v4451_v23, %v2796_v28 }
 0x320   :  { %v2798_v31 = vadd.f32 %v4451_v23, %v2797_v45 }
 0x322   :  { %v2802_v55 = vsel %vm2801_vm7, %v4451_v23, %v2798_v31 }
 0x323   :  { %v2807_v32 = vsel %vm2804_vm8, %v2806_v0, %v2802_v55 }
 0x324   :  { %2811 = vst.msk [vmem:[%s4769_s8 + $0x8] sm:$0xff] %vm2809_vm2, %v2807_v32 }
 0x325   :  { %2816 = vsyncpa [#allocation4], 1 }
 0x326   :  { %2817 = vsyncpa [#allocation6], 1 }

</bundles_post_ra>
